<compile_context>
chip_gen: v5e
topology: v5e:2x2
jax: 0.10.0
libtpu: 0.0.40
codegen_flags: <defaults>
</compile_context>

<pallas_src>
import functools
import re

import numpy as np
import jax
import jax.numpy as jnp
from jax.experimental import pallas as pl
from jax.experimental.pallas import tpu as pltpu


def _round_up(x, m):
    return (x + m - 1) // m * m


# ----------------------------------------------------------------------------
# Chip detection: VMEM budget/limit + MXU width policy.
# ----------------------------------------------------------------------------
_CHIP_CFG = None


def _chip():
    """Returns (vmem_budget_bytes, vmem_limit_bytes, mxu_wide)."""
    global _CHIP_CFG
    if _CHIP_CFG is None:
        vmem_phys = 64 * 1024 * 1024          # conservative default (v7x-sized)
        try:
            info = pltpu.get_tpu_info()
            for attr in ("vmem_capacity_bytes", "vmem_bytes", "vmem_size_bytes"):
                v = getattr(info, attr, None)
                if v:
                    vmem_phys = int(v)
                    break
        except Exception:
            pass
        mxu_wide = False                       # 256-wide MXU (v6e / v7x)
        try:
            kind = jax.devices()[0].device_kind
            m = re.search(r"(\d+)", kind)
            if m and int(m.group(1)) >= 6:
                mxu_wide = True
        except Exception:
            pass
        budget = max(24 << 20, min(int(vmem_phys * 0.42), 80 << 20))
        limit = max(40 << 20, min(int(vmem_phys * 0.68), 112 << 20))
        _CHIP_CFG = (budget, limit, mxu_wide)
    return _CHIP_CFG


def _select_tco(Cout):
    if Cout < 128:
        return Cout
    if _chip()[2] and Cout % 256 == 0:
        return 256
    return 128


# ----------------------------------------------------------------------------
# Standard kernel: one grid step = one (TH, W, TCo) channels-last output tile
# of a 3x3x3 "same" conv (cross-correlation), fused bias + ReLU.  kw taps are
# stacked on the N axis of the weight block, so 9 matmuls per tile.
# ----------------------------------------------------------------------------
def _conv3d_kernel(a0, a1, a2, b0, b1, b2, w_ref, bias_ref, o_ref):
    TH, W, TCo = o_ref.shape
    Wp8 = a0.shape[1]                  # padded width (multiple of 8)
    Cin = a0.shape[2]
    M = TH * Wp8
    N3 = 3 * TCo                       # kw-stacked output channels

    acc = jnp.zeros((M, N3), jnp.float32)
    for ra, rb, kd in ((a0, b0, 0), (a1, b1, 1), (a2, b2, 2)):
        # (TH+2, Wp8, Cin): TH resident rows + 2-row halo from the next tile.
        xcat = jnp.concatenate([ra[...], rb[...]], axis=0)
        for kh in range(3):
            xs = xcat[kh:kh + TH].reshape(M, Cin)        # aligned merge
            acc = acc + jnp.dot(xs, w_ref[kd, kh],
                                preferred_element_type=jnp.float32)

    # kw shift + combine (done once on the stacked result).
    acc3 = acc.reshape(TH, Wp8, N3)
    out = acc3[:, 0:W, 0:TCo] + bias_ref[...]
    out = out + acc3[:, 1:1 + W, TCo:2 * TCo]
    out = out + acc3[:, 2:2 + W, 2 * TCo:3 * TCo]
    o_ref[...] = jnp.maximum(out, 0.0).astype(o_ref.dtype)


# ----------------------------------------------------------------------------
# Transposed kernel for narrow Cout (the final conv1_2, Cout=3): spatial on
# the MXU N/lane axis, channels-first NCDHW output written directly.
# ----------------------------------------------------------------------------
def _conv3d_kernel_t(a0, a1, a2, b0, b1, b2, w_ref, bias_ref, o_ref):
    TCo, TH, W = o_ref.shape
    Wp = a0.shape[1]                   # padded width (multiple of 128)
    Cin = a0.shape[2]
    M = TH * Wp

    acc = jnp.zeros((3 * TCo, M), jnp.float32)
    for ra, rb, kd in ((a0, b0, 0), (a1, b1, 1), (a2, b2, 2)):
        xcat = jnp.concatenate([ra[...], rb[...]], axis=0)     # (TH+2, Wp, Cin)
        xT = xcat.reshape((TH + 2) * Wp, Cin).T                # one transpose / kd
        for kh in range(3):
            acc = acc + jnp.dot(w_ref[kd, kh],
                                xT[:, kh * Wp:kh * Wp + M],    # aligned lane slice
                                preferred_element_type=jnp.float32)

    acc4 = acc.reshape(3, TCo, TH, Wp)
    out = acc4[0, :, :, 0:W] + bias_ref[...]
    out = out + acc4[1, :, :, 1:1 + W]
    out = out + acc4[2, :, :, 2:2 + W]
    o_ref[...] = jnp.maximum(out, 0.0).astype(o_ref.dtype)


# ----------------------------------------------------------------------------
# VMEM estimates + tile selection.
# ----------------------------------------------------------------------------
def _vmem_estimate(TH, Wp8, W, Cin, TCo, out_bytes):
    M = TH * Wp8
    N3 = 3 * TCo
    in_bufs = 2 * 3 * (TH + 2) * Wp8 * Cin * 2          # main + halo, dbl-buffered
    w_bufs = 2 * (9 * Cin * N3 * 2 + TCo * 4)
    out_bufs = 2 * TH * W * TCo * out_bytes
    temps = (2 * M * N3 * 4                              # acc + matmul result
             + (TH + 2) * Wp8 * Cin * 2                  # xcat
             + M * Cin * 2                               # xs
             + 2 * TH * W * TCo * 4)                     # combine temporaries
    return in_bufs + w_bufs + out_bufs + temps


def _vmem_estimate_t(TH, Wp, W, Cin, Cout, out_bytes):
    M = TH * Wp
    R = 3 * Cout
    in_bufs = 2 * 3 * (TH + 2) * Wp * Cin * 2
    w_bufs = 2 * (9 * R * Cin * 2 + Cout * 4)
    out_bufs = 2 * Cout * TH * W * out_bytes
    temps = (2 * R * M * 4                               # acc + matmul result
             + 3 * (TH + 2) * Wp * Cin * 2               # xcat + xflat + xT
             + R * M * 4                                 # acc4 relayout copy
             + 3 * Cout * TH * W * 4)
    return in_bufs + w_bufs + out_bufs + temps


def _pick_tiles(H, W, Cin, Cout, out_bytes, max_th):
    assert H % 2 == 0, f"H must be even, got {H}"
    TCo = _select_tco(Cout)
    Wp8 = _round_up(W + 2, 8)
    budget = _chip()[0]
    cands = [t for t in range(H, 1, -1)
             if H % t == 0 and t % 2 == 0 and (max_th is None or t <= max_th)]
    TH = cands[-1]
    for t in cands:
        if _vmem_estimate(t, Wp8, W, Cin, TCo, out_bytes) <= budget:
            TH = t
            break
    return TH, TCo, Wp8


# ----------------------------------------------------------------------------
# Weight preparation (from PyTorch (Cout, Cin, 3, 3, 3) layout).
# ----------------------------------------------------------------------------
def _prep_weight_std(w, TCo):
    """-> (3, 3, Cin, 3*Cout) bf16, last axis ordered [co-tile | kw | TCo]."""
    Cout, Cin = int(w.shape[0]), int(w.shape[1])
    n_co = Cout // TCo
    wt = jnp.transpose(w, (2, 3, 4, 1, 0))               # (kd, kh, kw, Cin, Cout)
    wt = wt.reshape(3, 3, 3, Cin, n_co, TCo)
    wt = jnp.transpose(wt, (0, 1, 3, 4, 2, 5))           # (kd, kh, Cin, n_co, kw, TCo)
    return wt.reshape(3, 3, Cin, n_co * 3 * TCo).astype(jnp.bfloat16)


def _prep_weight_tr(w):
    """-> (3, 3, 3*Cout, Cin) bf16, rows ordered [kw | Cout]."""
    Cout, Cin = int(w.shape[0]), int(w.shape[1])
    wt = jnp.transpose(w, (2, 3, 4, 0, 1))               # (kd, kh, kw, Cout, Cin)
    return wt.reshape(3, 3, 3 * Cout, Cin).astype(jnp.bfloat16)


# ----------------------------------------------------------------------------
# Standard conv builder (one compile per signature).
# ----------------------------------------------------------------------------
@functools.lru_cache(maxsize=None)
def _get_conv(B, D, H, W, Cin, Cout, out_dtype_name, max_th):
    out_dtype = jnp.dtype(out_dtype_name)
    TH, TCo, Wp8 = _pick_tiles(H, W, Cin, Cout, out_dtype.itemsize, max_th)
    n_co = Cout // TCo
    n_h = H // TH
    half = TH // 2
    limit = _chip()[1]

    in_specs = []
    for kd in range(3):                                   # 3 "TH-row" blocks
        in_specs.append(pl.BlockSpec(
            (None, None, TH, Wp8, Cin),
            lambda co, b, d, t, kd=kd: (b, d + kd, t, 0, 0)))
    for kd in range(3):                                   # 3 "2-row halo" blocks
        in_specs.append(pl.BlockSpec(
            (None, None, 2, Wp8, Cin),
            lambda co, b, d, t, kd=kd: (b, d + kd, (t + 1) * half, 0, 0)))
    in_specs.append(pl.BlockSpec((3, 3, Cin, 3 * TCo),     # kw-stacked weights
                                 lambda co, b, d, t: (0, 0, 0, co)))
    in_specs.append(pl.BlockSpec((1, TCo), lambda co, b, d, t: (0, co)))

    out_spec = pl.BlockSpec((None, None, TH, W, TCo),
                            lambda co, b, d, t: (b, d, t, 0, co))

    call = pl.pallas_call(
        _conv3d_kernel,
        out_shape=jax.ShapeDtypeStruct((B, D, H, W, Cout), out_dtype),
        grid=(n_co, B, D, n_h),
        in_specs=in_specs,
        out_specs=out_spec,
        compiler_params=pltpu.CompilerParams(
            dimension_semantics=("parallel",) * 4,
            vmem_limit_bytes=limit),
    )

    def fn(x, wt, b2):
        # x: (B,D,H,W,Cin) bf16; wt: (3,3,Cin,3*Cout) bf16; b2: (1,Cout) f32
        xp = jnp.pad(x, ((0, 0), (1, 1), (1, 1), (1, Wp8 - W - 1), (0, 0)))
        return call(xp, xp, xp, xp, xp, xp, wt, b2)

    return jax.jit(fn)


def conv3d_relu(x, wt, b2, out_dtype=jnp.bfloat16, max_th=None):
    B, D, H, W, Cin = x.shape
    Cout = int(wt.shape[-1]) // 3
    fn = _get_conv(B, D, H, W, Cin, Cout, jnp.dtype(out_dtype).name, max_th)
    return fn(x, wt, b2)


# ----------------------------------------------------------------------------
# Transposed conv builder (narrow Cout, NCDHW output).
# ----------------------------------------------------------------------------
@functools.lru_cache(maxsize=None)
def _get_conv_t(B, D, H, W, Cin, Cout, out_dtype_name, max_th):
    out_dtype = jnp.dtype(out_dtype_name)
    assert Cout <= 128 and H % 2 == 0
    Wp = _round_up(W + 2, 128)
    budget, limit, _ = _chip()
    cands = [t for t in range(H, 1, -1)
             if H % t == 0 and t % 2 == 0 and (t % 8 == 0 or t == H)
             and (max_th is None or t <= max_th)]
    if not cands:
        raise ValueError("no valid TH for transposed conv")
    TH = cands[-1]
    for t in cands:
        if _vmem_estimate_t(t, Wp, W, Cin, Cout, out_dtype.itemsize) <= budget:
            TH = t
            break
    half = TH // 2
    n_h = H // TH

    in_specs = []
    for kd in range(3):
        in_specs.append(pl.BlockSpec(
            (None, None, TH, Wp, Cin),
            lambda b, d, t, kd=kd: (b, d + kd, t, 0, 0)))
    for kd in range(3):
        in_specs.append(pl.BlockSpec(
            (None, None, 2, Wp, Cin),
            lambda b, d, t, kd=kd: (b, d + kd, (t + 1) * half, 0, 0)))
    in_specs.append(pl.BlockSpec((3, 3, 3 * Cout, Cin),
                                 lambda b, d, t: (0, 0, 0, 0)))
    in_specs.append(pl.BlockSpec((Cout, 1, 1), lambda b, d, t: (0, 0, 0)))

    out_spec = pl.BlockSpec((None, Cout, None, TH, W),
                            lambda b, d, t: (b, 0, d, t, 0))

    call = pl.pallas_call(
        _conv3d_kernel_t,
        out_shape=jax.ShapeDtypeStruct((B, Cout, D, H, W), out_dtype),
        grid=(B, D, n_h),
        in_specs=in_specs,
        out_specs=out_spec,
        compiler_params=pltpu.CompilerParams(
            dimension_semantics=("parallel",) * 3,
            vmem_limit_bytes=limit),
    )

    def fn(x, wt, b2):
        xp = jnp.pad(x, ((0, 0), (1, 1), (1, 1), (1, Wp - W - 1), (0, 0)))
        return call(xp, xp, xp, xp, xp, xp, wt, b2)

    return jax.jit(fn)


def conv3d_relu_t(x, wt, b2, out_dtype=jnp.float32, max_th=None):
    B, D, H, W, Cin = x.shape
    Cout = int(wt.shape[2]) // 3
    fn = _get_conv_t(B, D, H, W, Cin, Cout, jnp.dtype(out_dtype).name, max_th)
    return fn(x, wt, b2)


# ----------------------------------------------------------------------------
# Reference conv (for self-checks / feature probe).
# ----------------------------------------------------------------------------
def _ref_conv(x_bf16, w_torch, b):
    xr = x_bf16.astype(jnp.float32)
    wr = jnp.transpose(w_torch.astype(jnp.bfloat16).astype(jnp.float32),
                       (2, 3, 4, 1, 0))
    y = jax.lax.conv_general_dilated(
        xr, wr, window_strides=(1, 1, 1), padding="SAME",
        dimension_numbers=("NDHWC", "DHWIO", "NDHWC"),
        precision=jax.lax.Precision.HIGHEST)
    return jnp.maximum(y + b, 0.0)


_TR_OK = None


def _transposed_final_ok():
    """Probe the transposed kernel at a tiny shape; fall back on any failure."""
    global _TR_OK
    if _TR_OK is not None:
        return _TR_OK
    try:
        kx, kw_, kb_ = jax.random.split(jax.random.PRNGKey(7), 3)
        x = jax.random.normal(kx, (1, 2, 16, 12, 16), jnp.float32)
        w = jax.random.normal(kw_, (3, 16, 3, 3, 3), jnp.float32) * 0.1
        b = jax.random.normal(kb_, (3,), jnp.float32) * 0.1
        xb = x.astype(jnp.bfloat16)
        y = conv3d_relu_t(xb, _prep_weight_tr(w), b.reshape(3, 1, 1),
                          out_dtype=jnp.float32, max_th=8)
        y = jax.block_until_ready(y)
        yref = jnp.transpose(_ref_conv(xb, w, b), (0, 4, 1, 2, 3))
        err = float(jnp.max(jnp.abs(y - yref)))
        _TR_OK = bool(err < 2e-2)
    except Exception:
        _TR_OK = False
    return _TR_OK


# ----------------------------------------------------------------------------
# Glue ops (memory-bound): MaxPool3d and nearest interpolation, plain JAX.
# ----------------------------------------------------------------------------
def maxpool3d(x, kernel, pad):
    """MaxPool3d with stride == kernel, -inf padding (PyTorch semantics)."""
    if any(pad):
        x = jnp.pad(x, ((0, 0), (pad[0],) * 2, (pad[1],) * 2, (pad[2],) * 2,
                        (0, 0)), constant_values=-jnp.inf)
    B, D, H, W, C = x.shape
    kd, kh, kw = kernel
    x = x.reshape(B, D // kd, kd, H // kh, kh, W // kw, kw, C)
    return x.max(axis=(2, 4, 6))


def interpolate_nearest(x, size):
    """torch.nn.functional.interpolate(mode='nearest'): src = floor(dst*in/out)."""
    B, D, H, W, C = x.shape
    od, oh, ow = size
    if od % D == 0 and oh % H == 0 and ow % W == 0:
        # Exact integer upsample: single broadcast instead of three gathers.
        rd, rh, rw = od // D, oh // H, ow // W
        y = jnp.broadcast_to(x[:, :, None, :, None, :, None, :],
                             (B, D, rd, H, rh, W, rw, C))
        return y.reshape(B, od, oh, ow, C)

    def idx(n_in, n_out):
        return jnp.array([min((i * n_in) // n_out, n_in - 1)
                          for i in range(n_out)], dtype=jnp.int32)

    x = jnp.take(x, idx(D, od), axis=1)
    x = jnp.take(x, idx(H, oh), axis=2)
    x = jnp.take(x, idx(W, ow), axis=3)
    return x


# ----------------------------------------------------------------------------
# Parameters (deterministic, PyTorch-Conv3d-style uniform init), stored in the
# kernel-native layouts.
# ----------------------------------------------------------------------------
_LAYERS = {
    "conv1":    (3, 64),    "conv2":    (64, 128),
    "conv3a":   (128, 256), "conv3b":   (256, 256),
    "conv4a":   (256, 512), "conv4b":   (512, 512),
    "conv5a":   (512, 512), "conv5b":   (512, 512),
    "conv5a_2": (512, 512), "conv5b_2": (512, 512),
    "conv4a_2": (512, 512), "conv4b_2": (512, 256),
    "conv3a_2": (256, 256), "conv3b_2": (256, 128),
    "conv2_2":  (128, 64),  "conv1_2":  (64, 3),
}


def init_params(key):
    use_tr = _transposed_final_ok()
    params = {}
    for name, (cin, cout) in _LAYERS.items():
        key, kw_, kb_ = jax.random.split(key, 3)
        bound = 1.0 / np.sqrt(cin * 27)
        w = jax.random.uniform(kw_, (cout, cin, 3, 3, 3), jnp.float32,
                               -bound, bound)
        b = jax.random.uniform(kb_, (cout,), jnp.float32, -bound, bound)
        if name == "conv1_2" and use_tr:
            params[name] = ("tr", _prep_weight_tr(w), b.reshape(cout, 1, 1))
        else:
            params[name] = ("std", _prep_weight_std(w, _select_tco(cout)),
                            b.reshape(1, cout))
    return params


# ----------------------------------------------------------------------------
# Full forward pass (matches C3dGenerator.forward)
# ----------------------------------------------------------------------------
def forward(params, x_ncdhw):
    x = jnp.transpose(x_ncdhw, (0, 2, 3, 4, 1)).astype(jnp.bfloat16)

    def conv(name, x, out_dtype=jnp.bfloat16):
        kind, w, b = params[name]
        if kind == "tr":
            return conv3d_relu_t(x, w, b, out_dtype=out_dtype)
        return conv3d_relu(x, w, b, out_dtype=out_dtype)

    x = conv("conv1", x)
    x = maxpool3d(x, (1, 2, 2), (0, 0, 0))
    x = conv("conv2", x)
    x = maxpool3d(x, (2, 2, 2), (0, 0, 0))
    x = conv("conv3a", x)
    x = conv("conv3b", x)
    x = maxpool3d(x, (2, 2, 2), (0, 0, 0))
    x = conv("conv4a", x)
    x = conv("conv4b", x)
    x = maxpool3d(x, (2, 2, 2), (0, 0, 0))
    x = conv("conv5a", x)
    x = conv("conv5b", x)
    x = maxpool3d(x, (2, 2, 2), (0, 1, 1))

    x = interpolate_nearest(x, (2, 20, 15))
    x = conv("conv5a_2", x)
    x = conv("conv5b_2", x)
    x = interpolate_nearest(x, (4, 40, 30))
    x = conv("conv4a_2", x)
    x = conv("conv4b_2", x)
    x = interpolate_nearest(x, (8, 80, 60))
    x = conv("conv3a_2", x)
    x = conv("conv3b_2", x)
    x = interpolate_nearest(x, (16, 160, 120))
    x = conv("conv2_2", x)
    x = interpolate_nearest(x, (16, 320, 240))
    x = conv("conv1_2", x, out_dtype=jnp.float32)

    if params["conv1_2"][0] == "tr":
        return x                                   # already NCDHW
    return jnp.transpose(x, (0, 4, 1, 2, 3))       # NDHWC -> NCDHW


# ----------------------------------------------------------------------------
# Self-checks of the Pallas convs against lax.conv (bf16-rounded operands).
# ----------------------------------------------------------------------------
def _selfcheck():
    # (a) small Cout: exercises the lane-misaligned kw-combine path (TCo < 128).
    kx, kw_, kb_ = jax.random.split(jax.random.PRNGKey(42), 3)
    x = jax.random.normal(kx, (1, 4, 8, 12, 16), jnp.float32)
    w = jax.random.normal(kw_, (32, 16, 3, 3, 3), jnp.float32) * 0.1
    b = jax.random.normal(kb_, (32,), jnp.float32) * 0.1
    xb = x.astype(jnp.bfloat16)
    y = conv3d_relu(xb, _prep_weight_std(w, _select_tco(32)), b.reshape(1, -1),
                    out_dtype=jnp.float32)
    err = float(jnp.max(jnp.abs(y - _ref_conv(xb, w, b))))
    assert err < 2e-2, f"conv self-check (a) failed: max abs err {err}"

    # (b) Cout=256 with forced H tiling: exercises halo blocks + wide/multi TCo.
    kx, kw_, kb_ = jax.random.split(jax.random.PRNGKey(43), 3)
    x = jax.random.normal(kx, (1, 3, 8, 16, 32), jnp.float32)
    w = jax.random.normal(kw_, (256, 32, 3, 3, 3), jnp.float32) * 0.05
    b = jax.random.normal(kb_, (256,), jnp.float32) * 0.05
    xb = x.astype(jnp.bfloat16)
    y = conv3d_relu(xb, _prep_weight_std(w, _select_tco(256)), b.reshape(1, -1),
                    out_dtype=jnp.float32, max_th=4)
    err = float(jnp.max(jnp.abs(y - _ref_conv(xb, w, b))))
    assert err < 2e-2, f"conv self-check (b) failed: max abs err {err}"


if __name__ == "__main__":
    _selfcheck()

    key = jax.random.PRNGKey(0)
    pkey, xkey = jax.random.split(key)
    params = init_params(pkey)

    # Small input consistent with the module: NCDHW = (1, 3, 16, 32, 32).
    # (The decoder's interpolate targets are hard-coded, so the output is
    #  always (B, 3, 16, 320, 240) regardless of input spatial size.)
    x = jax.random.normal(xkey, (1, 3, 16, 32, 32), jnp.float32)

    y = forward(params, x)
    y = jax.block_until_ready(y)

    assert y.shape == (1, 3, 16, 320, 240), y.shape
    assert y.dtype == jnp.float32
    assert bool(jnp.all(jnp.isfinite(y)))
    assert float(jnp.min(y)) >= 0.0        # final ReLU
    print("KERNEL_OK")
</pallas_src>

<mosaic_0001>
module attributes {stable_mosaic.version = 11 : i64} {
  func.func @_conv3d_kernel(%arg0: i32, %arg1: i32, %arg2: i32, %arg3: i32, %arg4: memref<1x1x8x16x16xbf16, #tpu.memory_space<vmem>>, %arg5: memref<1x1x8x16x16xbf16, #tpu.memory_space<vmem>>, %arg6: memref<1x1x8x16x16xbf16, #tpu.memory_space<vmem>>, %arg7: memref<1x1x2x16x16xbf16, #tpu.memory_space<vmem>>, %arg8: memref<1x1x2x16x16xbf16, #tpu.memory_space<vmem>>, %arg9: memref<1x1x2x16x16xbf16, #tpu.memory_space<vmem>>, %arg10: memref<3x3x16x96xbf16, #tpu.memory_space<vmem>>, %arg11: memref<1x32xf32, #tpu.memory_space<vmem>>, %arg12: memref<1x1x8x12x32xf32, #tpu.memory_space<vmem>>) attributes {dimension_semantics = [#tpu.dimension_semantics<parallel>, #tpu.dimension_semantics<parallel>, #tpu.dimension_semantics<parallel>, #tpu.dimension_semantics<parallel>], iteration_bounds = array<i64: 1, 1, 4, 1>, scalar_prefetch = 0 : i64, scratch_operands = 0 : i64, tpu.core_type = #tpu.core_type<tc>, window_params = [{transform_indices = @transform_0, window_bounds = array<i64: 1, 1, 8, 16, 16>}, {transform_indices = @transform_1, window_bounds = array<i64: 1, 1, 8, 16, 16>}, {transform_indices = @transform_2, window_bounds = array<i64: 1, 1, 8, 16, 16>}, {transform_indices = @transform_3, window_bounds = array<i64: 1, 1, 2, 16, 16>}, {transform_indices = @transform_4, window_bounds = array<i64: 1, 1, 2, 16, 16>}, {transform_indices = @transform_5, window_bounds = array<i64: 1, 1, 2, 16, 16>}, {transform_indices = @transform_6, window_bounds = array<i64: 3, 3, 16, 96>}, {transform_indices = @transform_7, window_bounds = array<i64: 1, 32>}, {transform_indices = @transform_8, window_bounds = array<i64: 1, 1, 8, 12, 32>}]} {
    %cst = arith.constant 0.000000e+00 : f32
    %0 = vector.broadcast %cst : f32 to vector<128x96xf32>
    %c0 = arith.constant 0 : index
    %c0_0 = arith.constant 0 : index
    %c0_1 = arith.constant 0 : index
    %c0_2 = arith.constant 0 : index
    %c0_3 = arith.constant 0 : index
    %1 = vector.load %arg4[%c0, %c0_0, %c0_1, %c0_2, %c0_3] : memref<1x1x8x16x16xbf16, #tpu.memory_space<vmem>>, vector<1x1x8x16x16xbf16>
    %2 = vector.shape_cast %1 : vector<1x1x8x16x16xbf16> to vector<8x16x16xbf16>
    %c0_4 = arith.constant 0 : index
    %c0_5 = arith.constant 0 : index
    %c0_6 = arith.constant 0 : index
    %c0_7 = arith.constant 0 : index
    %c0_8 = arith.constant 0 : index
    %3 = vector.load %arg7[%c0_4, %c0_5, %c0_6, %c0_7, %c0_8] : memref<1x1x2x16x16xbf16, #tpu.memory_space<vmem>>, vector<1x1x2x16x16xbf16>
    %4 = vector.shape_cast %3 : vector<1x1x2x16x16xbf16> to vector<2x16x16xbf16>
    %5 = tpu.concatenate %2, %4 in 0 : vector<8x16x16xbf16>, vector<2x16x16xbf16> -> vector<10x16x16xbf16>
    %6 = vector.extract_strided_slice %5 {offsets = [0, 0, 0], sizes = [8, 16, 16], strides = [1, 1, 1]} : vector<10x16x16xbf16> to vector<8x16x16xbf16>
    %7 = vector.shape_cast %6 : vector<8x16x16xbf16> to vector<128x16xbf16>
    %c0_9 = arith.constant 0 : index
    %c0_10 = arith.constant 0 : index
    %c0_11 = arith.constant 0 : index
    %c0_12 = arith.constant 0 : index
    %8 = vector.load %arg10[%c0_9, %c0_10, %c0_11, %c0_12] : memref<3x3x16x96xbf16, #tpu.memory_space<vmem>>, vector<1x1x16x96xbf16>
    %9 = vector.shape_cast %8 : vector<1x1x16x96xbf16> to vector<16x96xbf16>
    %cst_13 = arith.constant dense<0.000000e+00> : vector<128x96xf32>
    %10 = tpu.matmul %7, %9, %cst_13 {dimension_numbers = #tpu.dot_dimension_numbers<[1], [0], [0], [1], [0, 0, 1, 1], [], []>} : vector<128x16xbf16>, vector<16x96xbf16>, vector<128x96xf32> -> vector<128x96xf32>
    %11 = arith.addf %0, %10 : vector<128x96xf32>
    %12 = vector.extract_strided_slice %5 {offsets = [1, 0, 0], sizes = [8, 16, 16], strides = [1, 1, 1]} : vector<10x16x16xbf16> to vector<8x16x16xbf16>
    %13 = vector.shape_cast %12 : vector<8x16x16xbf16> to vector<128x16xbf16>
    %c0_14 = arith.constant 0 : index
    %c1 = arith.constant 1 : index
    %c0_15 = arith.constant 0 : index
    %c0_16 = arith.constant 0 : index
    %14 = vector.load %arg10[%c0_14, %c1, %c0_15, %c0_16] : memref<3x3x16x96xbf16, #tpu.memory_space<vmem>>, vector<1x1x16x96xbf16>
    %15 = vector.shape_cast %14 : vector<1x1x16x96xbf16> to vector<16x96xbf16>
    %cst_17 = arith.constant dense<0.000000e+00> : vector<128x96xf32>
    %16 = tpu.matmul %13, %15, %cst_17 {dimension_numbers = #tpu.dot_dimension_numbers<[1], [0], [0], [1], [0, 0, 1, 1], [], []>} : vector<128x16xbf16>, vector<16x96xbf16>, vector<128x96xf32> -> vector<128x96xf32>
    %17 = arith.addf %11, %16 : vector<128x96xf32>
    %18 = vector.extract_strided_slice %5 {offsets = [2, 0, 0], sizes = [8, 16, 16], strides = [1, 1, 1]} : vector<10x16x16xbf16> to vector<8x16x16xbf16>
    %19 = vector.shape_cast %18 : vector<8x16x16xbf16> to vector<128x16xbf16>
    %c0_18 = arith.constant 0 : index
    %c2 = arith.constant 2 : index
    %c0_19 = arith.constant 0 : index
    %c0_20 = arith.constant 0 : index
    %20 = vector.load %arg10[%c0_18, %c2, %c0_19, %c0_20] : memref<3x3x16x96xbf16, #tpu.memory_space<vmem>>, vector<1x1x16x96xbf16>
    %21 = vector.shape_cast %20 : vector<1x1x16x96xbf16> to vector<16x96xbf16>
    %cst_21 = arith.constant dense<0.000000e+00> : vector<128x96xf32>
    %22 = tpu.matmul %19, %21, %cst_21 {dimension_numbers = #tpu.dot_dimension_numbers<[1], [0], [0], [1], [0, 0, 1, 1], [], []>} : vector<128x16xbf16>, vector<16x96xbf16>, vector<128x96xf32> -> vector<128x96xf32>
    %23 = arith.addf %17, %22 : vector<128x96xf32>
    %c0_22 = arith.constant 0 : index
    %c0_23 = arith.constant 0 : index
    %c0_24 = arith.constant 0 : index
    %c0_25 = arith.constant 0 : index
    %c0_26 = arith.constant 0 : index
    %24 = vector.load %arg5[%c0_22, %c0_23, %c0_24, %c0_25, %c0_26] : memref<1x1x8x16x16xbf16, #tpu.memory_space<vmem>>, vector<1x1x8x16x16xbf16>
    %25 = vector.shape_cast %24 : vector<1x1x8x16x16xbf16> to vector<8x16x16xbf16>
    %c0_27 = arith.constant 0 : index
    %c0_28 = arith.constant 0 : index
    %c0_29 = arith.constant 0 : index
    %c0_30 = arith.constant 0 : index
    %c0_31 = arith.constant 0 : index
    %26 = vector.load %arg8[%c0_27, %c0_28, %c0_29, %c0_30, %c0_31] : memref<1x1x2x16x16xbf16, #tpu.memory_space<vmem>>, vector<1x1x2x16x16xbf16>
    %27 = vector.shape_cast %26 : vector<1x1x2x16x16xbf16> to vector<2x16x16xbf16>
    %28 = tpu.concatenate %25, %27 in 0 : vector<8x16x16xbf16>, vector<2x16x16xbf16> -> vector<10x16x16xbf16>
    %29 = vector.extract_strided_slice %28 {offsets = [0, 0, 0], sizes = [8, 16, 16], strides = [1, 1, 1]} : vector<10x16x16xbf16> to vector<8x16x16xbf16>
    %30 = vector.shape_cast %29 : vector<8x16x16xbf16> to vector<128x16xbf16>
    %c1_32 = arith.constant 1 : index
    %c0_33 = arith.constant 0 : index
    %c0_34 = arith.constant 0 : index
    %c0_35 = arith.constant 0 : index
    %31 = vector.load %arg10[%c1_32, %c0_33, %c0_34, %c0_35] : memref<3x3x16x96xbf16, #tpu.memory_space<vmem>>, vector<1x1x16x96xbf16>
    %32 = vector.shape_cast %31 : vector<1x1x16x96xbf16> to vector<16x96xbf16>
    %cst_36 = arith.constant dense<0.000000e+00> : vector<128x96xf32>
    %33 = tpu.matmul %30, %32, %cst_36 {dimension_numbers = #tpu.dot_dimension_numbers<[1], [0], [0], [1], [0, 0, 1, 1], [], []>} : vector<128x16xbf16>, vector<16x96xbf16>, vector<128x96xf32> -> vector<128x96xf32>
    %34 = arith.addf %23, %33 : vector<128x96xf32>
    %35 = vector.extract_strided_slice %28 {offsets = [1, 0, 0], sizes = [8, 16, 16], strides = [1, 1, 1]} : vector<10x16x16xbf16> to vector<8x16x16xbf16>
    %36 = vector.shape_cast %35 : vector<8x16x16xbf16> to vector<128x16xbf16>
    %c1_37 = arith.constant 1 : index
    %c1_38 = arith.constant 1 : index
    %c0_39 = arith.constant 0 : index
    %c0_40 = arith.constant 0 : index
    %37 = vector.load %arg10[%c1_37, %c1_38, %c0_39, %c0_40] : memref<3x3x16x96xbf16, #tpu.memory_space<vmem>>, vector<1x1x16x96xbf16>
    %38 = vector.shape_cast %37 : vector<1x1x16x96xbf16> to vector<16x96xbf16>
    %cst_41 = arith.constant dense<0.000000e+00> : vector<128x96xf32>
    %39 = tpu.matmul %36, %38, %cst_41 {dimension_numbers = #tpu.dot_dimension_numbers<[1], [0], [0], [1], [0, 0, 1, 1], [], []>} : vector<128x16xbf16>, vector<16x96xbf16>, vector<128x96xf32> -> vector<128x96xf32>
    %40 = arith.addf %34, %39 : vector<128x96xf32>
    %41 = vector.extract_strided_slice %28 {offsets = [2, 0, 0], sizes = [8, 16, 16], strides = [1, 1, 1]} : vector<10x16x16xbf16> to vector<8x16x16xbf16>
    %42 = vector.shape_cast %41 : vector<8x16x16xbf16> to vector<128x16xbf16>
    %c1_42 = arith.constant 1 : index
    %c2_43 = arith.constant 2 : index
    %c0_44 = arith.constant 0 : index
    %c0_45 = arith.constant 0 : index
    %43 = vector.load %arg10[%c1_42, %c2_43, %c0_44, %c0_45] : memref<3x3x16x96xbf16, #tpu.memory_space<vmem>>, vector<1x1x16x96xbf16>
    %44 = vector.shape_cast %43 : vector<1x1x16x96xbf16> to vector<16x96xbf16>
    %cst_46 = arith.constant dense<0.000000e+00> : vector<128x96xf32>
    %45 = tpu.matmul %42, %44, %cst_46 {dimension_numbers = #tpu.dot_dimension_numbers<[1], [0], [0], [1], [0, 0, 1, 1], [], []>} : vector<128x16xbf16>, vector<16x96xbf16>, vector<128x96xf32> -> vector<128x96xf32>
    %46 = arith.addf %40, %45 : vector<128x96xf32>
    %c0_47 = arith.constant 0 : index
    %c0_48 = arith.constant 0 : index
    %c0_49 = arith.constant 0 : index
    %c0_50 = arith.constant 0 : index
    %c0_51 = arith.constant 0 : index
    %47 = vector.load %arg6[%c0_47, %c0_48, %c0_49, %c0_50, %c0_51] : memref<1x1x8x16x16xbf16, #tpu.memory_space<vmem>>, vector<1x1x8x16x16xbf16>
    %48 = vector.shape_cast %47 : vector<1x1x8x16x16xbf16> to vector<8x16x16xbf16>
    %c0_52 = arith.constant 0 : index
    %c0_53 = arith.constant 0 : index
    %c0_54 = arith.constant 0 : index
    %c0_55 = arith.constant 0 : index
    %c0_56 = arith.constant 0 : index
    %49 = vector.load %arg9[%c0_52, %c0_53, %c0_54, %c0_55, %c0_56] : memref<1x1x2x16x16xbf16, #tpu.memory_space<vmem>>, vector<1x1x2x16x16xbf16>
    %50 = vector.shape_cast %49 : vector<1x1x2x16x16xbf16> to vector<2x16x16xbf16>
    %51 = tpu.concatenate %48, %50 in 0 : vector<8x16x16xbf16>, vector<2x16x16xbf16> -> vector<10x16x16xbf16>
    %52 = vector.extract_strided_slice %51 {offsets = [0, 0, 0], sizes = [8, 16, 16], strides = [1, 1, 1]} : vector<10x16x16xbf16> to vector<8x16x16xbf16>
    %53 = vector.shape_cast %52 : vector<8x16x16xbf16> to vector<128x16xbf16>
    %c2_57 = arith.constant 2 : index
    %c0_58 = arith.constant 0 : index
    %c0_59 = arith.constant 0 : index
    %c0_60 = arith.constant 0 : index
    %54 = vector.load %arg10[%c2_57, %c0_58, %c0_59, %c0_60] : memref<3x3x16x96xbf16, #tpu.memory_space<vmem>>, vector<1x1x16x96xbf16>
    %55 = vector.shape_cast %54 : vector<1x1x16x96xbf16> to vector<16x96xbf16>
    %cst_61 = arith.constant dense<0.000000e+00> : vector<128x96xf32>
    %56 = tpu.matmul %53, %55, %cst_61 {dimension_numbers = #tpu.dot_dimension_numbers<[1], [0], [0], [1], [0, 0, 1, 1], [], []>} : vector<128x16xbf16>, vector<16x96xbf16>, vector<128x96xf32> -> vector<128x96xf32>
    %57 = arith.addf %46, %56 : vector<128x96xf32>
    %58 = vector.extract_strided_slice %51 {offsets = [1, 0, 0], sizes = [8, 16, 16], strides = [1, 1, 1]} : vector<10x16x16xbf16> to vector<8x16x16xbf16>
    %59 = vector.shape_cast %58 : vector<8x16x16xbf16> to vector<128x16xbf16>
    %c2_62 = arith.constant 2 : index
    %c1_63 = arith.constant 1 : index
    %c0_64 = arith.constant 0 : index
    %c0_65 = arith.constant 0 : index
    %60 = vector.load %arg10[%c2_62, %c1_63, %c0_64, %c0_65] : memref<3x3x16x96xbf16, #tpu.memory_space<vmem>>, vector<1x1x16x96xbf16>
    %61 = vector.shape_cast %60 : vector<1x1x16x96xbf16> to vector<16x96xbf16>
    %cst_66 = arith.constant dense<0.000000e+00> : vector<128x96xf32>
    %62 = tpu.matmul %59, %61, %cst_66 {dimension_numbers = #tpu.dot_dimension_numbers<[1], [0], [0], [1], [0, 0, 1, 1], [], []>} : vector<128x16xbf16>, vector<16x96xbf16>, vector<128x96xf32> -> vector<128x96xf32>
    %63 = arith.addf %57, %62 : vector<128x96xf32>
    %64 = vector.extract_strided_slice %51 {offsets = [2, 0, 0], sizes = [8, 16, 16], strides = [1, 1, 1]} : vector<10x16x16xbf16> to vector<8x16x16xbf16>
    %65 = vector.shape_cast %64 : vector<8x16x16xbf16> to vector<128x16xbf16>
    %c2_67 = arith.constant 2 : index
    %c2_68 = arith.constant 2 : index
    %c0_69 = arith.constant 0 : index
    %c0_70 = arith.constant 0 : index
    %66 = vector.load %arg10[%c2_67, %c2_68, %c0_69, %c0_70] : memref<3x3x16x96xbf16, #tpu.memory_space<vmem>>, vector<1x1x16x96xbf16>
    %67 = vector.shape_cast %66 : vector<1x1x16x96xbf16> to vector<16x96xbf16>
    %cst_71 = arith.constant dense<0.000000e+00> : vector<128x96xf32>
    %68 = tpu.matmul %65, %67, %cst_71 {dimension_numbers = #tpu.dot_dimension_numbers<[1], [0], [0], [1], [0, 0, 1, 1], [], []>} : vector<128x16xbf16>, vector<16x96xbf16>, vector<128x96xf32> -> vector<128x96xf32>
    %69 = arith.addf %63, %68 : vector<128x96xf32>
    %70 = vector.shape_cast %69 : vector<128x96xf32> to vector<8x16x96xf32>
    %71 = vector.extract_strided_slice %70 {offsets = [0, 0, 0], sizes = [8, 12, 32], strides = [1, 1, 1]} : vector<8x16x96xf32> to vector<8x12x32xf32>
    %c0_72 = arith.constant 0 : index
    %c0_73 = arith.constant 0 : index
    %72 = vector.load %arg11[%c0_72, %c0_73] : memref<1x32xf32, #tpu.memory_space<vmem>>, vector<1x32xf32>
    %73 = vector.shape_cast %72 : vector<1x32xf32> to vector<1x1x32xf32>
    %74 = vector.broadcast %73 : vector<1x1x32xf32> to vector<8x12x32xf32>
    %75 = arith.addf %71, %74 : vector<8x12x32xf32>
    %76 = vector.extract_strided_slice %70 {offsets = [0, 1, 32], sizes = [8, 12, 32], strides = [1, 1, 1]} : vector<8x16x96xf32> to vector<8x12x32xf32>
    %77 = arith.addf %75, %76 : vector<8x12x32xf32>
    %78 = vector.extract_strided_slice %70 {offsets = [0, 2, 64], sizes = [8, 12, 32], strides = [1, 1, 1]} : vector<8x16x96xf32> to vector<8x12x32xf32>
    %79 = arith.addf %77, %78 : vector<8x12x32xf32>
    %cst_74 = arith.constant 0.000000e+00 : f32
    %80 = vector.broadcast %cst_74 : f32 to vector<8x12x32xf32>
    %81 = arith.maximumf %79, %80 : vector<8x12x32xf32>
    %c0_75 = arith.constant 0 : index
    %c0_76 = arith.constant 0 : index
    %c0_77 = arith.constant 0 : index
    %c0_78 = arith.constant 0 : index
    %c0_79 = arith.constant 0 : index
    %82 = vector.load %arg12[%c0_75, %c0_76, %c0_77, %c0_78, %c0_79] : memref<1x1x8x12x32xf32, #tpu.memory_space<vmem>>, vector<1x1x8x12x32xf32>
    %83 = vector.shape_cast %82 : vector<1x1x8x12x32xf32> to vector<8x12x32xf32>
    %84 = vector.shape_cast %81 : vector<8x12x32xf32> to vector<1x1x8x12x32xf32>
    tpu.vector_store %arg12[%c0_75, %c0_76, %c0_77, %c0_78, %c0_79], %84 {strides = array<i32>} : memref<1x1x8x12x32xf32, #tpu.memory_space<vmem>>, vector<1x1x8x12x32xf32>,
    return
  }
  func.func @transform_0(%arg0: i32, %arg1: i32, %arg2: i32, %arg3: i32) -> (i32, i32, i32, i32, i32) {
    %c0_i32 = arith.constant 0 : i32
    %0 = arith.addi %arg2, %c0_i32 : i32
    %c0_i32_0 = arith.constant 0 : i32
    %c0_i32_1 = arith.constant 0 : i32
    %c0_i32_2 = arith.constant 0 : i32
    return %arg1, %0, %arg3, %c0_i32_0, %c0_i32_1 : i32, i32, i32, i32, i32
  }
  func.func @transform_1(%arg0: i32, %arg1: i32, %arg2: i32, %arg3: i32) -> (i32, i32, i32, i32, i32) {
    %c1_i32 = arith.constant 1 : i32
    %0 = arith.addi %arg2, %c1_i32 : i32
    %c0_i32 = arith.constant 0 : i32
    %c0_i32_0 = arith.constant 0 : i32
    %c0_i32_1 = arith.constant 0 : i32
    return %arg1, %0, %arg3, %c0_i32, %c0_i32_0 : i32, i32, i32, i32, i32
  }
  func.func @transform_2(%arg0: i32, %arg1: i32, %arg2: i32, %arg3: i32) -> (i32, i32, i32, i32, i32) {
    %c2_i32 = arith.constant 2 : i32
    %0 = arith.addi %arg2, %c2_i32 : i32
    %c0_i32 = arith.constant 0 : i32
    %c0_i32_0 = arith.constant 0 : i32
    %c0_i32_1 = arith.constant 0 : i32
    return %arg1, %0, %arg3, %c0_i32, %c0_i32_0 : i32, i32, i32, i32, i32
  }
  func.func @transform_3(%arg0: i32, %arg1: i32, %arg2: i32, %arg3: i32) -> (i32, i32, i32, i32, i32) {
    %c0_i32 = arith.constant 0 : i32
    %0 = arith.addi %arg2, %c0_i32 : i32
    %c1_i32 = arith.constant 1 : i32
    %1 = arith.addi %arg3, %c1_i32 : i32
    %c4_i32 = arith.constant 4 : i32
    %2 = arith.muli %1, %c4_i32 : i32
    %c0_i32_0 = arith.constant 0 : i32
    %c0_i32_1 = arith.constant 0 : i32
    %c0_i32_2 = arith.constant 0 : i32
    return %arg1, %0, %2, %c0_i32_0, %c0_i32_1 : i32, i32, i32, i32, i32
  }
  func.func @transform_4(%arg0: i32, %arg1: i32, %arg2: i32, %arg3: i32) -> (i32, i32, i32, i32, i32) {
    %c1_i32 = arith.constant 1 : i32
    %0 = arith.addi %arg2, %c1_i32 : i32
    %c1_i32_0 = arith.constant 1 : i32
    %1 = arith.addi %arg3, %c1_i32_0 : i32
    %c4_i32 = arith.constant 4 : i32
    %2 = arith.muli %1, %c4_i32 : i32
    %c0_i32 = arith.constant 0 : i32
    %c0_i32_1 = arith.constant 0 : i32
    %c0_i32_2 = arith.constant 0 : i32
    return %arg1, %0, %2, %c0_i32, %c0_i32_1 : i32, i32, i32, i32, i32
  }
  func.func @transform_5(%arg0: i32, %arg1: i32, %arg2: i32, %arg3: i32) -> (i32, i32, i32, i32, i32) {
    %c2_i32 = arith.constant 2 : i32
    %0 = arith.addi %arg2, %c2_i32 : i32
    %c1_i32 = arith.constant 1 : i32
    %1 = arith.addi %arg3, %c1_i32 : i32
    %c4_i32 = arith.constant 4 : i32
    %2 = arith.muli %1, %c4_i32 : i32
    %c0_i32 = arith.constant 0 : i32
    %c0_i32_0 = arith.constant 0 : i32
    %c0_i32_1 = arith.constant 0 : i32
    return %arg1, %0, %2, %c0_i32, %c0_i32_0 : i32, i32, i32, i32, i32
  }
  func.func @transform_6(%arg0: i32, %arg1: i32, %arg2: i32, %arg3: i32) -> (i32, i32, i32, i32) {
    %c0_i32 = arith.constant 0 : i32
    %c0_i32_0 = arith.constant 0 : i32
    %c0_i32_1 = arith.constant 0 : i32
    %c0_i32_2 = arith.constant 0 : i32
    return %c0_i32, %c0_i32_0, %c0_i32_1, %arg0 : i32, i32, i32, i32
  }
  func.func @transform_7(%arg0: i32, %arg1: i32, %arg2: i32, %arg3: i32) -> (i32, i32) {
    %c0_i32 = arith.constant 0 : i32
    %c0_i32_0 = arith.constant 0 : i32
    return %c0_i32, %arg0 : i32, i32
  }
  func.func @transform_8(%arg0: i32, %arg1: i32, %arg2: i32, %arg3: i32) -> (i32, i32, i32, i32, i32) {
    %c0_i32 = arith.constant 0 : i32
    %c0_i32_0 = arith.constant 0 : i32
    return %arg1, %arg2, %arg3, %c0_i32, %arg0 : i32, i32, i32, i32, i32
  }
}

</mosaic_0001>

<bundles_post_ra>
// kernel: fn.1
= control target key start
LH: loop header
LB: loop body
LE: loop exit
PB: predicated region body
PF: predicated region fallthrough
CT: control target
= control target key end

     0   :  { %s2733_s27 = smov 0   ;;  %s2735_s28 = smov 0   ;;  %s3241_s0 = inlined_call_operand.vmem [shape: bf16[1,6,10,16,16], index: 0, kind: input, shape index: {}, may-alias: {0,1,2,3,4,5}]   ;;  %s3242_s1 = inlined_call_operand.vmem [shape: bf16[1,6,10,16,16], index: 1, kind: input, shape index: {}, may-alias: {0,1,2,3,4,5}]   ;;  %s3243_s2 = inlined_call_operand.vmem [shape: bf16[1,6,10,16,16], index: 2, kind: input, shape index: {}, may-alias: {0,1,2,3,4,5}]   ;;  %s3244_s3 = inlined_call_operand.vmem [shape: bf16[1,6,10,16,16], index: 3, kind: input, shape index: {}, may-alias: {0,1,2,3,4,5}]   ;;  %s3245_s4 = inlined_call_operand.vmem [shape: bf16[1,6,10,16,16], index: 4, kind: input, shape index: {}, may-alias: {0,1,2,3,4,5}]   ;;  %s3246_s5 = inlined_call_operand.vmem [shape: bf16[1,6,10,16,16], index: 5, kind: input, shape index: {}, may-alias: {0,1,2,3,4,5}]   ;;  %s3247_s6 = inlined_call_operand.vmem [shape: bf16[3,3,16,96], index: 6, kind: input, shape index: {}]   ;;  %s3248_s7 = inlined_call_operand.vmem [shape: f32[1,32], index: 7, kind: input, shape index: {}]   ;;  %s3249_s8 = inlined_call_operand.vmem [shape: f32[1,4,8,12,32], index: 8, kind: output, shape index: {}]  }
   0x1   :  { %s2737_s29 = smov 0  }
   0x2 LB: > { %s36_s30 = sadd.s32 1, %s2680_s28  ;;  %p2322_p0 = scmp.ge.s32.totalorder %s2684_s29, 1  ;;  %s2684_s29 = sphi %s2737_s29, %s18_s29   ;;  %s2680_s28 = sphi %s2735_s28, %s3251_s28   ;;  %s2676_s27 = sphi %s2733_s27, %s3250_s27  }
   0x3   : > { %p38_p1 = scmp.ge.s32.totalorder %s36_s30, 4  ;;  %p515_p2 = scmp.lt.s32.totalorder %s2684_s29, 5 }
   0x5   : > { %s3253_s30 = smov (%p38_p1, %s36_s30), 0  ;;  %p516_p3 = pnand %p2322_p0, %p515_p2 }
   0x6   : > { %p680_p4 = scmp.lt.s32.totalorder (!%p516_p3), %s2676_s27, 5  ;;  %s697_s15 = sadd.s32 (!%p516_p3), 1, %s2676_s27 }
   0x7   : > { %519 = sbr.rel (%p516_p3) target bundleno = 567 (0x237), region = 52  ;;  %p706_p5 = scmp.lt.s32.totalorder (!%p516_p3), %s697_s15, 5 }
   0x8   : > { %p822_p7 = scmp.lt.s32.totalorder (!%p516_p3), %s2676_s27, 3 }
   0xc   : > { %v2595_v0 = vld [vmem:[%s3247_s6 + $0x8] sm:$0xff]  ;;  %v2596_v1 = vld [vmem:[%s3247_s6 + $0x10] sm:$0xff]  ;;  %v2607_v2 = vld [vmem:[%s3247_s6 + $0x18] sm:$0xff]  ;;  %s681_s20 = scalar_select %p680_p4, %s2676_s27, 5  ;;  %vm909_vm0 = vcmask 130048   ;;  %vm1897_vm1 = vcmask 1045504  }
   0xd   : > { %v2594_v3 = vld [vmem:[%s3247_s6] sm:$0xff]  ;;  %2623 = vmatpush.bf16.msra.mxu1 %v2595_v0  ;;  %2624 = vmatpush.bf16.msra.mxu2 %v2595_v0  ;;  %s3255_s15 = smov (!%p706_p5, %s697_s15), 5  ;;  %v2620_v9 = vld [vmem:[%s3247_s6 + $0x30] sm:$0xff]  ;;  %v2621_v10 = vld [vmem:[%s3247_s6 + $0x38] sm:$0xff]  ;;  %vm1808_vm2 = vcmask 1046528   ;;  %vm2004_vm3 = vcmask 257024  }
   0xe   : > { %v2608_v4 = vld [vmem:[%s3247_s6 + $0x20] sm:$0xff]  ;;  %2625 = vmatpush.bf16.msra.mxu3 %v2595_v0  ;;  %941 = vmatpush.bf16.msra.mxu0 %v2595_v0  ;;  %s2626_s21 = smul.u32 80, %s681_s20  ;;  %v2609_v11 = vld [vmem:[%s3247_s6 + $0x28] sm:$0xff]  ;;  %vm2002_vm4 = vcmask 261120  }
   0xf   : > { %v2622_v12 = vld [vmem:[%s3247_s6 + $0x40] sm:$0xff]  ;;  %s2627_s20 = smul.u32 80, %s3255_s15 }
  0x10   : > { %s2776_s24 = scalar_lea.vmem %s3241_s0, %s2626_s21  ;;  %s2578_s16 = sadd.s32 64, %s2626_s21 }
  0x11   : > { %1070 = vmatpush.bf16.msrb.mxu2 %v2596_v1  ;;  %1004 = vmatpush.bf16.msrb.mxu1 %v2594_v3  ;;  %v2587_v5 = vld [vmem:[%s2776_s24 + $0x18] sm:$0xff]  ;;  %v2589_v6 = vld [vmem:[%s2776_s24 + $0x28] sm:$0xff]  ;;  %s2804_s19 = scalar_lea.vmem %s3244_s3, %s2578_s16  ;;  %v2588_v13 = vld [vmem:[%s2776_s24 + $0x20] sm:$0xff]  ;;  %s724_s21 = sadd.s32 2, %s2676_s27 }
  0x12   : > { %1228 = vmatpush.bf16.msrb.mxu3 %v2607_v2  ;;  %1310 = vmatpush.bf16.msrb.mxu0 %v2608_v4  ;;  %v2781_v7 = vld [vmem:[%s2776_s24 + $0x38] sm:$0xff]  ;;  %v2585_v8 = vld [vmem:[%s2776_s24 + $0x8] sm:$0xff]  ;;  %v2590_v14 = vld [vmem:[%s2776_s24 + $0x30] sm:$0xff]  ;;  %p733_p6 = scmp.lt.s32.totalorder %s724_s21, 5  ;;  %s2821_s25 = scalar_lea.vmem %s3242_s1, %s2627_s20 }
  0x13   : > { %2371 = vmatmul.msk.bf16.vlgmr.msra.gmra.mxu1 %vm909_vm0, %v2587_v5  ;;  %2373 = vmatmul.msk.bf16.vlgmr.msra.gmra.mxu2 %vm909_vm0, %v2589_v6  ;;  %v2592_v15 = vld [vmem:[%s2804_s19] sm:$0xff]  ;;  %v2586_v16 = vld [vmem:[%s2776_s24 + $0x10] sm:$0xff]  ;;  %v2598_v19 = vld [vmem:[%s2821_s25 + $0x8] sm:$0xff]  ;;  %s3259_s27 = smov (!%p822_p7, %s2676_s27), 3 }
  0x14   : > { %2375 = vmatmul.msk.bf16.vlgmr.msra.gmra.mxu3 %vm909_vm0, %v2781_v7  ;;  %2369 = vmatmul.msk.bf16.vlgmr.msra.gmra.mxu0 %vm909_vm0, %v2585_v8  ;;  %s3257_s21 = smov (!%p733_p6, %s724_s21), 5  ;;  %v2584_v17 = vld [vmem:[%s2776_s24] sm:$0xff]  ;;  %v2599_v20 = vld [vmem:[%s2821_s25 + $0x10] sm:$0xff]  ;;  %v2838_v21 = vld [vmem:[%s2821_s25 + $0x18] sm:$0xff]  ;;  %s2580_s24 = sadd.s32 64, %s2627_s20 }
  0x15   : > { %1550 = vmatpush.bf16.msra.mxu2 %v2620_v9  ;;  %1392 = vmatpush.bf16.msra.mxu1 %v2609_v11  ;;  %v2597_v18 = vld [vmem:[%s2821_s25] sm:$0xff]  ;;  %v2855_v23 = vld [vmem:[%s2821_s25 + $0x28] sm:$0xff]  ;;  %v2864_v24 = vld [vmem:[%s2821_s25 + $0x30] sm:$0xff]  ;;  %s2895_s10 = scalar_lea.vmem %s3245_s4, %s2580_s24  ;;  %s2628_s15 = smul.u32 80, %s3257_s21 }
  0x16   : > { %1632 = vmatpush.bf16.msra.mxu3 %v2621_v10  ;;  %1714 = vmatpush.bf16.msra.mxu0 %v2622_v12  ;;  %v2846_v22 = vld [vmem:[%s2821_s25 + $0x20] sm:$0xff]  ;;  %v2876_v26 = vld [vmem:[%s2821_s25 + $0x38] sm:$0xff]  ;;  %v2593_v34 = vld [vmem:[%s2804_s19 + $0x8] sm:$0xff]  ;;  %s2686_s19 = smov 64   ;;  %s2687_s20 = smov 96  }
  0x17   : > { %v2905_v36 = vld [vmem:[%s2895_s10] sm:$0xff]  ;;  %s2926_s13 = scalar_lea.vmem %s3243_s2, %s2628_s15  ;;  %s2582_s14 = sadd.s32 64, %s2628_s15 }
  0x18   : > { %v2610_v44 = vld [vmem:[%s2926_s13] sm:$0xff]  ;;  %v2611_v46 = vld [vmem:[%s2926_s13 + $0x8] sm:$0xff]  ;;  %v2612_v47 = vld [vmem:[%s2926_s13 + $0x10] sm:$0xff]  ;;  %s807_s18 = scalar_lea.vmem %s3246_s5, %s2582_s14  ;;  %s2583_s23 = sshll.u32 %s3259_s27, 7 }
  0x19   : > { %v2613_v62 = vld [vmem:[%s2926_s13 + $0x18] sm:$0xff]  ;;  %s3166_s26 = scalar_lea.vmem %s3249_s8, %s2583_s23 }
  0x23   : > { %2372 = vmatmul.msk.bf16.gmra.mxu1 %vm909_vm0, %v2588_v13  ;;  %2374 = vmatmul.msk.bf16.gmra.mxu2 %vm909_vm0, %v2590_v14 }
  0x24   : > { %2376 = vmatmul.msk.bf16.gmra.mxu3 %vm909_vm0, %v2592_v15  ;;  %2370 = vmatmul.msk.bf16.gmra.mxu0 %vm909_vm0, %v2586_v16 }
  0x33   : > { %2385 = vmatmul.msk.bf16.vlgmr.msrb.gmra.mxu1 %vm909_vm0, %v2584_v17  ;;  %2403 = vmatmul.msk.bf16.vlgmr.msrb.gmra.mxu2 %vm909_vm0, %v2586_v16 }
  0x34   : > { %2449 = vmatmul.msk.bf16.vlgmr.msrb.gmra.mxu3 %vm909_vm0, %v2597_v18  ;;  %2467 = vmatmul.msk.bf16.vlgmr.msrb.gmra.mxu0 %vm909_vm0, %v2598_v19 }
  0x43   : > { %2386 = vmatmul.msk.bf16.gmra.mxu1 %vm909_vm0, %v2585_v8  ;;  %2404 = vmatmul.msk.bf16.gmra.mxu2 %vm909_vm0, %v2587_v5 }
  0x44   : > { %2450 = vmatmul.msk.bf16.gmra.mxu3 %vm909_vm0, %v2598_v19  ;;  %2468 = vmatmul.msk.bf16.gmra.mxu0 %vm909_vm0, %v2599_v20 }
  0x53   : > { %2387 = vmatmul.msk.bf16.gmra.mxu1 %vm909_vm0, %v2586_v16  ;;  %2405 = vmatmul.msk.bf16.gmra.mxu2 %vm909_vm0, %v2588_v13 }
  0x54   : > { %2451 = vmatmul.msk.bf16.gmra.mxu3 %vm909_vm0, %v2599_v20  ;;  %2469 = vmatmul.msk.bf16.gmra.mxu0 %vm909_vm0, %v2838_v21 }
  0x63   : > { %2388 = vmatmul.msk.bf16.gmra.mxu1 %vm909_vm0, %v2587_v5  ;;  %2406 = vmatmul.msk.bf16.gmra.mxu2 %vm909_vm0, %v2589_v6 }
  0x64   : > { %2452 = vmatmul.msk.bf16.gmra.mxu3 %vm909_vm0, %v2838_v21  ;;  %2470 = vmatmul.msk.bf16.gmra.mxu0 %vm909_vm0, %v2846_v22 }
  0x73   : > { %2389 = vmatmul.msk.bf16.gmra.mxu1 %vm909_vm0, %v2588_v13  ;;  %2407 = vmatmul.msk.bf16.gmra.mxu2 %vm909_vm0, %v2590_v14 }
  0x74   : > { %2453 = vmatmul.msk.bf16.gmra.mxu3 %vm909_vm0, %v2846_v22  ;;  %2471 = vmatmul.msk.bf16.gmra.mxu0 %vm909_vm0, %v2855_v23 }
  0x83   : > { %2390 = vmatmul.msk.bf16.gmra.mxu1 %vm909_vm0, %v2589_v6  ;;  %2408 = vmatmul.msk.bf16.gmra.mxu2 %vm909_vm0, %v2781_v7 }
  0x84   : > { %2454 = vmatmul.msk.bf16.gmra.mxu3 %vm909_vm0, %v2855_v23  ;;  %2472 = vmatmul.msk.bf16.gmra.mxu0 %vm909_vm0, %v2864_v24 }
  0x90   : > { %v2873_v25 = vpop.f32.mrf.mxu1 }
  0x91   : > { %v943_v27 = vpop.f32.mrf.mxu0 }
  0x93   : > { %2391 = vmatmul.msk.bf16.gmra.mxu1 %vm909_vm0, %v2590_v14  ;;  %2409 = vmatmul.msk.bf16.gmra.mxu2 %vm909_vm0, %v2592_v15  ;;  %v2614_v15 = vld [vmem:[%s2926_s13 + $0x20] sm:$0xff] }
  0x94   : > { %2455 = vmatmul.msk.bf16.gmra.mxu3 %vm909_vm0, %v2864_v24  ;;  %2473 = vmatmul.msk.bf16.gmra.mxu0 %vm909_vm0, %v2876_v26 }
  0x96   : > { %v2884_v28 = vpop.f32.mrf.mxu2 }
  0x97   : > { %v2886_v29 = vpop.f32.mrf.mxu3 }
  0x98   : > { %v2888_v30 = vpop.f32.mrf.mxu1 }
  0x99   : > { %v945_v31 = vpop.f32.mrf.mxu0 }
  0x9e   : > { %v2897_v32 = vpop.f32.mrf.mxu2 }
  0x9f   : > { %v2899_v33 = vpop.f32.mrf.mxu3 }
  0xa0   : > { %v2902_v35 = vpop.f32.mrf.mxu1 }
  0xa1   : > { %v948_v37 = vpop.f32.mrf.mxu0 }
  0xa3   : > { %2392 = vmatmul.msk.bf16.gmra.mxu1 %vm909_vm0, %v2781_v7  ;;  %2410 = vmatmul.msk.bf16.gmra.mxu2 %vm909_vm0, %v2593_v34 }
  0xa4   : > { %2456 = vmatmul.msk.bf16.gmra.mxu3 %vm909_vm0, %v2876_v26  ;;  %2474 = vmatmul.msk.bf16.gmra.mxu0 %vm909_vm0, %v2905_v36 }
  0xa6   : > { %v2914_v38 = vpop.f32.mrf.mxu2 }
  0xa7   : > { %v2916_v39 = vpop.f32.mrf.mxu3 }
  0xa8   : > { %v2918_v40 = vpop.f32.mrf.mxu1 }
  0xa9   : > { %v950_v41 = vpop.f32.mrf.mxu0 }
  0xae   : > { %v2928_v42 = vpop.f32.mrf.mxu2 }
  0xaf   : > { %v2930_v43 = vpop.f32.mrf.mxu3 }
  0xb0   : > { %v1006_v45 = vpop.f32.mrf.mxu1 }
  0xb1   : > { %v1007_v48 = vadd.f32 %v1006_v45, %v943_v27  ;;  %v1312_v49 = vpop.f32.mrf.mxu0 }
  0xb3   : > { %2485 = vmatmul.msk.bf16.vlgmr.msra.gmra.mxu1 %vm909_vm0, %v2599_v20  ;;  %2531 = vmatmul.msk.bf16.vlgmr.msra.gmra.mxu2 %vm909_vm0, %v2610_v44 }
  0xb4   : > { %2549 = vmatmul.msk.bf16.vlgmr.msra.gmra.mxu3 %vm909_vm0, %v2611_v46  ;;  %2567 = vmatmul.msk.bf16.vlgmr.msra.gmra.mxu0 %vm909_vm0, %v2612_v47 }
  0xb6   : > { %v1072_v50 = vpop.f32.mrf.mxu2 }
  0xb7   : > { %v1112_v51 = vadd.f32 %v1072_v50, %v1007_v48  ;;  %v1230_v52 = vpop.f32.mrf.mxu3 }
  0xb8   : > { %v1008_v53 = vpop.f32.mrf.mxu1 }
  0xb9   : > { %v1270_v54 = vadd.f32 %v1230_v52, %v1112_v51  ;;  %v1009_v55 = vadd.f32 %v1008_v53, %v945_v31  ;;  %v1314_v56 = vpop.f32.mrf.mxu0 }
  0xbb   : > { %v2939_v57 = vadd.f32 %v1312_v49, %v1270_v54 }
  0xbe   : > { %v1074_v58 = vpop.f32.mrf.mxu2 }
  0xbf   : > { %v1113_v59 = vadd.f32 %v1074_v58, %v1009_v55  ;;  %v1232_v60 = vpop.f32.mrf.mxu3 }
  0xc0   : > { %v1011_v61 = vpop.f32.mrf.mxu1 }
  0xc1   : > { %v1271_v63 = vadd.f32 %v1232_v60, %v1113_v59  ;;  %v1012_v0 = vadd.f32 %v1011_v61, %v948_v37  ;;  %v1317_v1 = vpop.f32.mrf.mxu0 }
  0xc3   : > { %2486 = vmatmul.msk.bf16.gmra.mxu1 %vm909_vm0, %v2838_v21  ;;  %2532 = vmatmul.msk.bf16.gmra.mxu2 %vm909_vm0, %v2611_v46  ;;  %v2945_v2 = vadd.f32 %v1314_v56, %v1271_v63 }
  0xc4   : > { %2550 = vmatmul.msk.bf16.gmra.mxu3 %vm909_vm0, %v2612_v47  ;;  %2568 = vmatmul.msk.bf16.gmra.mxu0 %vm909_vm0, %v2613_v62 }
  0xc6   : > { %v1077_v3 = vpop.f32.mrf.mxu2 }
  0xc7   : > { %v1114_v4 = vadd.f32 %v1077_v3, %v1012_v0  ;;  %v1235_v5 = vpop.f32.mrf.mxu3 }
  0xc8   : > { %v1013_v6 = vpop.f32.mrf.mxu1 }
  0xc9   : > { %v1272_v7 = vadd.f32 %v1235_v5, %v1114_v4  ;;  %v1014_v8 = vadd.f32 %v1013_v6, %v950_v41  ;;  %v1319_v9 = vpop.f32.mrf.mxu0 }
  0xcb   : > { %v2949_v10 = vadd.f32 %v1317_v1, %v1272_v7 }
  0xce   : > { %v1079_v11 = vpop.f32.mrf.mxu2 }
  0xcf   : > { %v1115_v12 = vadd.f32 %v1079_v11, %v1014_v8  ;;  %v1237_v13 = vpop.f32.mrf.mxu3 }
  0xd0   : > { %v1016_v14 = vpop.f32.mrf.mxu1 }
  0xd1   : > { %v1273_v16 = vadd.f32 %v1237_v13, %v1115_v12  ;;  %v1017_v17 = vadd.f32 %v1016_v14, %v2873_v25  ;;  %v1322_v18 = vpop.f32.mrf.mxu0 }
  0xd3   : > { %2487 = vmatmul.msk.bf16.gmra.mxu1 %vm909_vm0, %v2846_v22  ;;  %2533 = vmatmul.msk.bf16.gmra.mxu2 %vm909_vm0, %v2612_v47  ;;  %v2956_v19 = vadd.f32 %v1319_v9, %v1273_v16  ;;  %v2615_v47 = vld [vmem:[%s2926_s13 + $0x28] sm:$0xff] }
  0xd4   : > { %2551 = vmatmul.msk.bf16.gmra.mxu3 %vm909_vm0, %v2613_v62  ;;  %2569 = vmatmul.msk.bf16.gmra.mxu0 %vm909_vm0, %v2614_v15 }
  0xd6   : > { %v1082_v20 = vpop.f32.mrf.mxu2 }
  0xd7   : > { %v1116_v21 = vadd.f32 %v1082_v20, %v1017_v17  ;;  %v1240_v27 = vpop.f32.mrf.mxu3 }
  0xd8   : > { %v1018_v31 = vpop.f32.mrf.mxu1 }
  0xd9   : > { %v1274_v34 = vadd.f32 %v1240_v27, %v1116_v21  ;;  %v1019_v25 = vadd.f32 %v1018_v31, %v2888_v30  ;;  %v1324_v37 = vpop.f32.mrf.mxu0 }
  0xdb   : > { %v2961_v41 = vadd.f32 %v1322_v18, %v1274_v34 }
  0xde   : > { %v1084_v22 = vpop.f32.mrf.mxu2 }
  0xdf   : > { %v1117_v44 = vadd.f32 %v1084_v22, %v1019_v25  ;;  %v1242_v45 = vpop.f32.mrf.mxu3 }
  0xe0   : > { %v1021_v46 = vpop.f32.mrf.mxu1 }
  0xe1   : > { %v1275_v48 = vadd.f32 %v1242_v45, %v1117_v44  ;;  %v1022_v49 = vadd.f32 %v1021_v46, %v2902_v35  ;;  %v1327_v50 = vpop.f32.mrf.mxu0  ;;  %v2618_v45 = vld [vmem:[%s807_s18] sm:$0xff] }
  0xe3   : > { %2488 = vmatmul.msk.bf16.gmra.mxu1 %vm909_vm0, %v2855_v23  ;;  %2534 = vmatmul.msk.bf16.gmra.mxu2 %vm909_vm0, %v2613_v62  ;;  %v2968_v51 = vadd.f32 %v1324_v37, %v1275_v48  ;;  %v2616_v62 = vld [vmem:[%s2926_s13 + $0x30] sm:$0xff] }
  0xe4   : > { %2552 = vmatmul.msk.bf16.gmra.mxu3 %vm909_vm0, %v2614_v15  ;;  %2570 = vmatmul.msk.bf16.gmra.mxu0 %vm909_vm0, %v2615_v47 }
  0xe6   : > { %v1087_v30 = vpop.f32.mrf.mxu2 }
  0xe7   : > { %v1118_v52 = vadd.f32 %v1087_v30, %v1022_v49  ;;  %v1245_v53 = vpop.f32.mrf.mxu3 }
  0xe8   : > { %v1023_v54 = vpop.f32.mrf.mxu1 }
  0xe9   : > { %v1276_v55 = vadd.f32 %v1245_v53, %v1118_v52  ;;  %v1024_v35 = vadd.f32 %v1023_v54, %v2918_v40  ;;  %v1329_v56 = vpop.f32.mrf.mxu0 }
  0xeb   : > { %v2973_v58 = vadd.f32 %v1327_v50, %v1276_v55 }
  0xee   : > { %v1089_v23 = vpop.f32.mrf.mxu2 }
  0xef   : > { %v1119_v59 = vadd.f32 %v1089_v23, %v1024_v35  ;;  %v1247_v60 = vpop.f32.mrf.mxu3 }
  0xf0   : > { %v1026_v61 = vpop.f32.mrf.mxu1 }
  0xf1   : > { %v1277_v63 = vadd.f32 %v1247_v60, %v1119_v59  ;;  %v1332_v0 = vpop.f32.mrf.mxu0  ;;  %v1027_v40 = vadd.f32 %v1026_v61, %v2884_v28  ;;  %v2606_v59 = vld [vmem:[%s2895_s10 + $0x8] sm:$0xff] }
  0xf2   : > { %v2619_v61 = vld [vmem:[%s807_s18 + $0x8] sm:$0xff] }
  0xf3   : > { %2489 = vmatmul.msk.bf16.gmra.mxu1 %vm909_vm0, %v2864_v24  ;;  %2535 = vmatmul.msk.bf16.gmra.mxu2 %vm909_vm0, %v2614_v15  ;;  %v2979_v1 = vadd.f32 %v1329_v56, %v1277_v63  ;;  %v2617_v15 = vld [vmem:[%s2926_s13 + $0x38] sm:$0xff] }
  0xf4   : > { %2553 = vmatmul.msk.bf16.gmra.mxu3 %vm909_vm0, %v2615_v47  ;;  %2571 = vmatmul.msk.bf16.gmra.mxu0 %vm909_vm0, %v2616_v62 }
  0xf6   : > { %v1092_v3 = vpop.f32.mrf.mxu2 }
  0xf7   : > { %v1120_v4 = vadd.f32 %v1092_v3, %v1027_v40  ;;  %v1250_v5 = vpop.f32.mrf.mxu3 }
  0xf8   : > { %v1028_v6 = vpop.f32.mrf.mxu1 }
  0xf9   : > { %v1278_v7 = vadd.f32 %v1250_v5, %v1120_v4  ;;  %v1334_v8 = vpop.f32.mrf.mxu0  ;;  %v1029_v24 = vadd.f32 %v1028_v6, %v2897_v32 }
  0xfb   : > { %v2984_v9 = vadd.f32 %v1332_v0, %v1278_v7 }
  0xfe   : > { %v1094_v11 = vpop.f32.mrf.mxu2 }
  0xff   : > { %v1121_v12 = vadd.f32 %v1094_v11, %v1029_v24  ;;  %v1252_v13 = vpop.f32.mrf.mxu3 }
 0x100   : > { %v1031_v14 = vpop.f32.mrf.mxu1 }
 0x101   : > { %v1279_v16 = vadd.f32 %v1252_v13, %v1121_v12  ;;  %v1337_v17 = vpop.f32.mrf.mxu0  ;;  %v1032_v32 = vadd.f32 %v1031_v14, %v2914_v38 }
 0x103   : > { %2490 = vmatmul.msk.bf16.gmra.mxu1 %vm909_vm0, %v2876_v26  ;;  %2536 = vmatmul.msk.bf16.gmra.mxu2 %vm909_vm0, %v2615_v47  ;;  %v2991_v28 = vadd.f32 %v1334_v8, %v1279_v16 }
 0x104   : > { %2554 = vmatmul.msk.bf16.gmra.mxu3 %vm909_vm0, %v2616_v62  ;;  %2572 = vmatmul.msk.bf16.gmra.mxu0 %vm909_vm0, %v2617_v15 }
 0x106   : > { %v1097_v18 = vpop.f32.mrf.mxu2 }
 0x107   : > { %v1122_v20 = vadd.f32 %v1097_v18, %v1032_v32  ;;  %v1255_v21 = vpop.f32.mrf.mxu3 }
 0x108   : > { %v1033_v27 = vpop.f32.mrf.mxu1 }
 0x109   : > { %v1280_v31 = vadd.f32 %v1255_v21, %v1122_v20  ;;  %v1339_v34 = vpop.f32.mrf.mxu0  ;;  %v1034_v26 = vadd.f32 %v1033_v27, %v2928_v42 }
 0x10b   : > { %v2998_v25 = vadd.f32 %v1337_v17, %v1280_v31 }
 0x10e   : > { %v1099_v37 = vpop.f32.mrf.mxu2 }
 0x10f   : > { %v1123_v22 = vadd.f32 %v1099_v37, %v1034_v26  ;;  %v1257_v44 = vpop.f32.mrf.mxu3 }
 0x110   : > { %v1036_v38 = vpop.f32.mrf.mxu1 }
 0x111   : > { %v1281_v46 = vadd.f32 %v1257_v44, %v1123_v22  ;;  %v1342_v47 = vpop.f32.mrf.mxu0  ;;  %v1037_v42 = vadd.f32 %v1036_v38, %v2886_v29 }
 0x113   : > { %2491 = vmatmul.msk.bf16.gmra.mxu1 %vm909_vm0, %v2905_v36  ;;  %2537 = vmatmul.msk.bf16.gmra.mxu2 %vm909_vm0, %v2616_v62  ;;  %v3007_v48 = vadd.f32 %v1339_v34, %v1281_v46 }
 0x114   : > { %2555 = vmatmul.msk.bf16.gmra.mxu3 %vm909_vm0, %v2617_v15  ;;  %2573 = vmatmul.msk.bf16.gmra.mxu0 %vm909_vm0, %v2618_v45 }
 0x116   : > { %v1102_v49 = vpop.f32.mrf.mxu2 }
 0x117   : > { %v1124_v50 = vadd.f32 %v1102_v49, %v1037_v42  ;;  %v1260_v30 = vpop.f32.mrf.mxu3 }
 0x118   : > { %v1038_v52 = vpop.f32.mrf.mxu1 }
 0x119   : > { %v1282_v53 = vadd.f32 %v1260_v30, %v1124_v50  ;;  %v1344_v54 = vpop.f32.mrf.mxu0  ;;  %v1039_v36 = vadd.f32 %v1038_v52, %v2899_v33 }
 0x11b   : > { %v3012_v55 = vadd.f32 %v1342_v47, %v1282_v53 }
 0x11e   : > { %v1104_v35 = vpop.f32.mrf.mxu2 }
 0x11f   : > { %v1125_v56 = vadd.f32 %v1104_v35, %v1039_v36  ;;  %v1262_v23 = vpop.f32.mrf.mxu3 }
 0x120   : > { %v1041_v60 = vpop.f32.mrf.mxu1 }
 0x121   : > { %v1283_v62 = vadd.f32 %v1262_v23, %v1125_v56  ;;  %v1347_v63 = vpop.f32.mrf.mxu0  ;;  %v1042_v33 = vadd.f32 %v1041_v60, %v2916_v39 }
 0x123   : > { %2492 = vmatmul.msk.bf16.gmra.mxu1 %vm909_vm0, %v2606_v59  ;;  %2538 = vmatmul.msk.bf16.gmra.mxu2 %vm909_vm0, %v2617_v15  ;;  %v3018_v29 = vadd.f32 %v1344_v54, %v1283_v62 }
 0x124   : > { %2556 = vmatmul.msk.bf16.gmra.mxu3 %vm909_vm0, %v2618_v45  ;;  %2574 = vmatmul.msk.bf16.gmra.mxu0 %vm909_vm0, %v2619_v61 }
 0x126   : > { %v1107_v0 = vpop.f32.mrf.mxu2 }
 0x127   : > { %v1126_v40 = vadd.f32 %v1107_v0, %v1042_v33  ;;  %v1265_v3 = vpop.f32.mrf.mxu3 }
 0x128   : > { %v1043_v4 = vpop.f32.mrf.mxu1 }
 0x129   : > { %v1284_v5 = vadd.f32 %v1265_v3, %v1126_v40  ;;  %v1349_v6 = vpop.f32.mrf.mxu0  ;;  %v1044_v8 = vadd.f32 %v1043_v4, %v2930_v43 }
 0x12b   : > { %v3023_v7 = vadd.f32 %v1347_v63, %v1284_v5 }
 0x12e   : > { %v1109_v24 = vpop.f32.mrf.mxu2 }
 0x12f   : > { %v1127_v11 = vadd.f32 %v1109_v24, %v1044_v8  ;;  %v1267_v12 = vpop.f32.mrf.mxu3 }
 0x130   : > { %v1394_v13 = vpop.f32.mrf.mxu1 }
 0x131   : > { %v1285_v14 = vadd.f32 %v1267_v12, %v1127_v11  ;;  %v1716_v15 = vpop.f32.mrf.mxu0  ;;  %v1434_v39 = vadd.f32 %v1394_v13, %v2939_v57 }
 0x133   : > { %v3026_v16 = vadd.f32 %v1349_v6, %v1285_v14 }
 0x136   : > { %v1552_v17 = vpop.f32.mrf.mxu2 }
 0x137   : > { %v1634_v32 = vpop.f32.mrf.mxu3  ;;  %v1592_v20 = vadd.f32 %v1552_v17, %v1434_v39 }
 0x138   : > { %v1396_v18 = vpop.f32.mrf.mxu1 }
 0x139   : > { %v1718_v21 = vpop.f32.mrf.mxu0  ;;  %v1674_v27 = vadd.f32 %v1634_v32, %v1592_v20  ;;  %v1435_v31 = vadd.f32 %v1396_v18, %v2945_v2 }
 0x13b   : > { %v3030_v22 = vadd.f32 %v1716_v15, %v1674_v27 }
 0x13d   : > { %v1898_v47 = vrot.slane %v3030_v22, 2  ;;  %v1809_v2 = vrot.slane %v3030_v22, 1 }
 0x13e   : > { %v1554_v34 = vpop.f32.mrf.mxu2 }
 0x13f   : > { %v1593_v43 = vadd.f32 %v1554_v34, %v1435_v31  ;;  %v1636_v26 = vpop.f32.mrf.mxu3 }
 0x140   : > { %v1399_v37 = vpop.f32.mrf.mxu1 }
 0x141   : > { %v1675_v44 = vadd.f32 %v1636_v26, %v1593_v43  ;;  %v1721_v38 = vpop.f32.mrf.mxu0  ;;  %v1436_v49 = vadd.f32 %v1399_v37, %v2949_v10 }
 0x143   : > { %v3032_v45 = vadd.f32 %v1718_v21, %v1675_v44 }
 0x145   : > { %v1899_v57 = vrot.slane %v3032_v45, 2  ;;  %v1810_v46 = vrot.slane %v3032_v45, 1 }
 0x146   : > { %v1557_v42 = vpop.f32.mrf.mxu2 }
 0x147   : > { %v1639_v50 = vpop.f32.mrf.mxu3  ;;  %1924 = vrot.lane.b32.xlu2 %v1899_v57, %s2686_s19  ;;  %1835 = vrot.lane.b32.xlu0 %v1810_v46, %s2687_s20  ;;  %v1900_v30 = vsel %vm1897_vm1, %v1898_v47, %v1899_v57  ;;  %v1811_v52 = vsel %vm1808_vm2, %v1809_v2, %v1810_v46  ;;  %v1594_v54 = vadd.f32 %v1557_v42, %v1436_v49 }
 0x148   : > { %v1401_v53 = vpop.f32.mrf.mxu1  ;;  %1922 = vrot.lane.b32.xlu1 %v1900_v30, %s2686_s19 }
 0x149   : > { %v1723_v36 = vpop.f32.mrf.mxu0  ;;  %v1676_v35 = vadd.f32 %v1639_v50, %v1594_v54  ;;  %v1437_v56 = vadd.f32 %v1401_v53, %v2956_v19 }
 0x14b   : > { %v3046_v61 = vadd.f32 %v1721_v38, %v1676_v35 }
 0x14d   : > { %v1901_v40 = vrot.slane %v3046_v61, 2  ;;  %v1812_v19 = vrot.slane %v3046_v61, 1 }
 0x14e   : > { %v1559_v10 = vpop.f32.mrf.mxu2 }
 0x14f   : > { %v1595_v23 = vadd.f32 %v1559_v10, %v1437_v56  ;;  %v1641_v59 = vpop.f32.mrf.mxu3  ;;  %1833 = vrot.lane.b32.xlu0 %v1811_v52, %s2687_s20 }
 0x150   : > { %v1404_v60 = vpop.f32.mrf.mxu1 }
 0x151   : > { %v1677_v62 = vadd.f32 %v1641_v59, %v1595_v23  ;;  %v1726_v63 = vpop.f32.mrf.mxu0  ;;  %v1438_v5 = vadd.f32 %v1404_v60, %v2961_v41 }
 0x153   : > { %v3048_v33 = vadd.f32 %v1723_v36, %v1677_v62 }
 0x155   : > { %v1813_v0 = vrot.slane %v3048_v33, 1  ;;  %v1902_v3 = vrot.slane %v3048_v33, 2 }
 0x156   : > { %v1562_v4 = vpop.f32.mrf.mxu2 }
 0x157   : > { %v1644_v6 = vpop.f32.mrf.mxu3  ;;  %1839 = vrot.lane.b32.xlu1 %v1813_v0, %s2687_s20  ;;  %v1903_v8 = vsel %vm1897_vm1, %v1901_v40, %v1902_v3  ;;  %v1814_v24 = vsel %vm1808_vm2, %v1812_v19, %v1813_v0  ;;  %v1596_v12 = vadd.f32 %v1562_v4, %v1438_v5 }
 0x158   : > { %v1406_v11 = vpop.f32.mrf.mxu1  ;;  %1926 = vrot.lane.b32.xlu0 %v1903_v8, %s2686_s19 }
 0x159   : > { %v1728_v13 = vpop.f32.mrf.mxu0  ;;  %v1678_v14 = vadd.f32 %v1644_v6, %v1596_v12  ;;  %v1439_v15 = vadd.f32 %v1406_v11, %v2968_v51 }
 0x15b   : > { %v3061_v18 = vadd.f32 %v1726_v63, %v1678_v14 }
 0x15d   : > { %v1815_v43 = vrot.slane %v3061_v18, 1  ;;  %v1904_v51 = vrot.slane %v3061_v18, 2 }
 0x15e   : > { %v1564_v17 = vpop.f32.mrf.mxu2 }
 0x15f   : > { %v1597_v39 = vadd.f32 %v1564_v17, %v1439_v15  ;;  %v1646_v32 = vpop.f32.mrf.mxu3  ;;  %1928 = vrot.lane.b32.xlu1 %v1902_v3, %s2686_s19 }
 0x160   : > { %v1409_v41 = vpop.f32.mrf.mxu1 }
 0x161   : > { %v1679_v20 = vadd.f32 %v1646_v32, %v1597_v39  ;;  %v1731_v21 = vpop.f32.mrf.mxu0  ;;  %v1440_v37 = vadd.f32 %v1409_v41, %v2973_v58 }
 0x163   : > { %v3063_v27 = vadd.f32 %v1728_v13, %v1679_v20 }
 0x165   : > { %v1816_v31 = vrot.slane %v3063_v27, 1  ;;  %v1905_v34 = vrot.slane %v3063_v27, 2 }
 0x166   : > { %v1567_v26 = vpop.f32.mrf.mxu2 }
 0x167   : > { %v1649_v44 = vpop.f32.mrf.mxu3  ;;  %1843 = vrot.lane.b32.xlu2 %v1816_v31, %s2687_s20  ;;  %1837 = vrot.lane.b32.xlu1 %v1814_v24, %s2687_s20  ;;  %v1817_v38 = vsel %vm1808_vm2, %v1815_v43, %v1816_v31  ;;  %v1906_v57 = vsel %vm1897_vm1, %v1904_v51, %v1905_v34  ;;  %v1598_v47 = vadd.f32 %v1567_v26, %v1440_v37 }
 0x168   : > { %1932 = vrot.lane.b32.xlu0 %v1905_v34, %s2686_s19  ;;  %v1411_v46 = vpop.f32.mrf.mxu1 }
 0x169   : > { %v1733_v2 = vpop.f32.mrf.mxu0  ;;  %v1680_v42 = vadd.f32 %v1649_v44, %v1598_v47  ;;  %v1441_v49 = vadd.f32 %v1411_v46, %v2979_v1 }
 0x16b   : > { %v3077_v53 = vadd.f32 %v1731_v21, %v1680_v42 }
 0x16d   : > { %v1818_v10 = vrot.slane %v3077_v53, 1  ;;  %v1907_v1 = vrot.slane %v3077_v53, 2 }
 0x16e   : > { %v1569_v50 = vpop.f32.mrf.mxu2 }
 0x16f   : > { %v1599_v30 = vadd.f32 %v1569_v50, %v1441_v49  ;;  %v1651_v58 = vpop.f32.mrf.mxu3  ;;  %1841 = vrot.lane.b32.xlu2 %v1817_v38, %s2687_s20 }
 0x170   : > { %v1414_v52 = vpop.f32.mrf.mxu1 }
 0x171   : > { %v1681_v54 = vadd.f32 %v1651_v58, %v1599_v30  ;;  %v1736_v36 = vpop.f32.mrf.mxu0  ;;  %v1442_v60 = vadd.f32 %v1414_v52, %v2984_v9 }
 0x173   : > { %v3079_v35 = vadd.f32 %v1733_v2, %v1681_v54 }
 0x175   : > { %v1819_v56 = vrot.slane %v3079_v35, 1  ;;  %v1908_v23 = vrot.slane %v3079_v35, 2 }
 0x176   : > { %v1572_v59 = vpop.f32.mrf.mxu2 }
 0x177   : > { %v1654_v62 = vpop.f32.mrf.mxu3  ;;  %1930 = vrot.lane.b32.xlu2 %v1906_v57, %s2686_s19  ;;  %1847 = vrot.lane.b32.xlu1 %v1819_v56, %s2687_s20  ;;  %v1820_v63 = vsel %vm1808_vm2, %v1818_v10, %v1819_v56  ;;  %v1909_v0 = vsel %vm1897_vm1, %v1907_v1, %v1908_v23  ;;  %v1600_v3 = vadd.f32 %v1572_v59, %v1442_v60 }
 0x178   : > { %v1416_v40 = vpop.f32.mrf.mxu1  ;;  %1845 = vrot.lane.b32.xlu0 %v1820_v63, %s2687_s20 }
 0x179   : > { %v1738_v19 = vpop.f32.mrf.mxu0  ;;  %v1682_v4 = vadd.f32 %v1654_v62, %v1600_v3  ;;  %v1443_v5 = vadd.f32 %v1416_v40, %v2991_v28 }
 0x17b   : > { %v3094_v11 = vadd.f32 %v1736_v36, %v1682_v4 }
 0x17d   : > { %v1821_v28 = vrot.slane %v3094_v11, 1  ;;  %v1910_v39 = vrot.slane %v3094_v11, 2 }
 0x17e   : > { %v1574_v6 = vpop.f32.mrf.mxu2 }
 0x17f   : > { %v1601_v8 = vadd.f32 %v1574_v6, %v1443_v5  ;;  %v1656_v9 = vpop.f32.mrf.mxu3  ;;  %1936 = vrot.lane.b32.xlu2 %v1908_v23, %s2686_s19  ;;  %1934 = vrot.lane.b32.xlu1 %v1909_v0, %s2686_s19 }
 0x180   : > { %v1419_v24 = vpop.f32.mrf.mxu1 }
 0x181   : > { %v1683_v12 = vadd.f32 %v1656_v9, %v1601_v8  ;;  %v1741_v13 = vpop.f32.mrf.mxu0  ;;  %v1444_v41 = vadd.f32 %v1419_v24, %v2998_v25 }
 0x183   : > { %v3096_v14 = vadd.f32 %v1738_v19, %v1683_v12 }
 0x185   : > { %v1911_v15 = vrot.slane %v3096_v14, 2  ;;  %v1822_v17 = vrot.slane %v3096_v14, 1 }
 0x186   : > { %v1577_v32 = vpop.f32.mrf.mxu2 }
 0x187   : > { %v1659_v20 = vpop.f32.mrf.mxu3  ;;  %1940 = vrot.lane.b32.xlu1 %v1911_v15, %s2686_s19  ;;  %1851 = vrot.lane.b32.xlu0 %v1822_v17, %s2687_s20  ;;  %v1823_v21 = vsel %vm1808_vm2, %v1821_v28, %v1822_v17  ;;  %v1912_v31 = vsel %vm1897_vm1, %v1910_v39, %v1911_v15  ;;  %v1602_v43 = vadd.f32 %v1577_v32, %v1444_v41 }
 0x188   : > { %v1421_v34 = vpop.f32.mrf.mxu1  ;;  %1849 = vrot.lane.b32.xlu2 %v1823_v21, %s2687_s20 }
 0x189   : > { %v1743_v51 = vpop.f32.mrf.mxu0  ;;  %v1684_v26 = vadd.f32 %v1659_v20, %v1602_v43  ;;  %v1445_v37 = vadd.f32 %v1421_v34, %v3007_v48 }
 0x18b   : > { %v3110_v46 = vadd.f32 %v1741_v13, %v1684_v26 }
 0x18d   : > { %v1824_v30 = vrot.slane %v3110_v46, 1  ;;  %v1913_v48 = vrot.slane %v3110_v46, 2 }
 0x18e   : > { %v1579_v44 = vpop.f32.mrf.mxu2 }
 0x18f   : > { %v1603_v38 = vadd.f32 %v1579_v44, %v1445_v37  ;;  %v1661_v25 = vpop.f32.mrf.mxu3  ;;  %1938 = vrot.lane.b32.xlu0 %v1912_v31, %s2686_s19  ;;  %v3154_v44 = vld [vmem:[%s3248_s7] ss:$0 sm:$0xff] }
 0x190   : > { %v1424_v57 = vpop.f32.mrf.mxu1 }
 0x191   : > { %v1685_v47 = vadd.f32 %v1661_v25, %v1603_v38  ;;  %v1746_v42 = vpop.f32.mrf.mxu0  ;;  %v1446_v52 = vadd.f32 %v1424_v57, %v3012_v55  ;;  %v1777_v57 = vadd.f32 %v3154_v44, %v3032_v45  ;;  %v1776_v45 = vadd.f32 %v3154_v44, %v3030_v22 }
 0x193   : > { %v3112_v2 = vadd.f32 %v1743_v51, %v1685_v47 }
 0x195   : > { %v1825_v49 = vrot.slane %v3112_v2, 1  ;;  %v1914_v50 = vrot.slane %v3112_v2, 2 }
 0x196   : > { %v1582_v58 = vpop.f32.mrf.mxu2 }
 0x197   : > { %v1664_v54 = vpop.f32.mrf.mxu3  ;;  %1855 = vrot.lane.b32.xlu2 %v1825_v49, %s2687_s20  ;;  %1944 = vrot.lane.b32.xlu0 %v1914_v50, %s2686_s19  ;;  %v1826_v36 = vsel %vm1808_vm2, %v1824_v30, %v1825_v49  ;;  %v1915_v56 = vsel %vm1897_vm1, %v1913_v48, %v1914_v50  ;;  %v1604_v23 = vadd.f32 %v1582_v58, %v1446_v52 }
 0x198   : > { %v1426_v10 = vpop.f32.mrf.mxu1  ;;  %1853 = vrot.lane.b32.xlu1 %v1826_v36, %s2687_s20 }
 0x199   : > { %v1686_v1 = vadd.f32 %v1664_v54, %v1604_v23  ;;  %v1447_v59 = vadd.f32 %v1426_v10, %v3018_v29  ;;  %v1748_v60 = vpop.f32.mrf.mxu0 }
 0x19b   : > { %v3126_v40 = vadd.f32 %v1746_v42, %v1686_v1  ;;  %v1780_v1 = vadd.f32 %v3154_v44, %v3061_v18 }
 0x19d   : > { %v1827_v5 = vrot.slane %v3126_v40, 1  ;;  %v1916_v6 = vrot.slane %v3126_v40, 2 }
 0x19e   : > { %v1584_v62 = vpop.f32.mrf.mxu2 }
 0x19f   : > { %v1605_v63 = vadd.f32 %v1584_v62, %v1447_v59  ;;  %v1666_v55 = vpop.f32.mrf.mxu3  ;;  %1942 = vrot.lane.b32.xlu2 %v1915_v56, %s2686_s19  ;;  %v1779_v59 = vadd.f32 %v3154_v44, %v3048_v33  ;;  %v1778_v33 = vadd.f32 %v3154_v44, %v3046_v61 }
 0x1a0   : > { %v1429_v0 = vpop.f32.mrf.mxu1 }
 0x1a1   : > { %v1687_v3 = vadd.f32 %v1666_v55, %v1605_v63  ;;  %v1448_v9 = vadd.f32 %v1429_v0, %v3023_v7  ;;  %v1751_v15 = vpop.f32.mrf.mxu0  ;;  %v1925_v47 = vpop.permute.xlu2 %1924 }
 0x1a3   : > { %v3128_v19 = vadd.f32 %v1748_v60, %v1687_v3 }
 0x1a5   : > { %v1828_v4 = vrot.slane %v3128_v19, 1  ;;  %v1917_v29 = vrot.slane %v3128_v19, 2 }
 0x1a6   : > { %v1587_v8 = vpop.f32.mrf.mxu2 }
 0x1a7   : > { %v1669_v24 = vpop.f32.mrf.mxu3  ;;  %1859 = vrot.lane.b32.xlu1 %v1828_v4, %s2687_s20  ;;  %v1829_v12 = vsel %vm1808_vm2, %v1827_v5, %v1828_v4  ;;  %v1918_v13 = vsel %vm1897_vm1, %v1916_v6, %v1917_v29  ;;  %v1606_v17 = vadd.f32 %v1587_v8, %v1448_v9  ;;  %v1781_v6 = vadd.f32 %v3154_v44, %v3063_v27 }
 0x1a8   : > { %1857 = vrot.lane.b32.xlu0 %v1829_v12, %s2687_s20  ;;  %v1431_v28 = vpop.f32.mrf.mxu1  ;;  %v1783_v27 = vadd.f32 %v3154_v44, %v3079_v35 }
 0x1a9   : > { %v1688_v39 = vadd.f32 %v1669_v24, %v1606_v17  ;;  %v1449_v32 = vadd.f32 %v1431_v28, %v3026_v16  ;;  %v1753_v34 = vpop.f32.mrf.mxu0 }
 0x1ab   : > { %v3141_v21 = vadd.f32 %v1751_v15, %v1688_v39 }
 0x1ad   : > { %v1830_v37 = vrot.slane %v3141_v21, 1  ;;  %v1919_v16 = vrot.slane %v3141_v21, 2 }
 0x1ae   : > { %v1589_v41 = vpop.f32.mrf.mxu2 }
 0x1af   : > { %v1607_v20 = vadd.f32 %v1589_v41, %v1449_v32  ;;  %1946 = vrot.lane.b32.xlu1 %v1918_v13, %s2686_s19  ;;  %v1671_v7 = vpop.f32.mrf.mxu3 }
 0x1b1   : > { %v1689_v31 = vadd.f32 %v1671_v7, %v1607_v20  ;;  %v1782_v20 = vadd.f32 %v3154_v44, %v3077_v53  ;;  %v1784_v53 = vadd.f32 %v3154_v44, %v3094_v11  ;;  %v1786_v11 = vadd.f32 %v3154_v44, %v3110_v46 }
 0x1b3   : > { %v3144_v43 = vadd.f32 %v1753_v34, %v1689_v31 }
 0x1b5   : > { %v1920_v51 = vrot.slane %v3144_v43, 2  ;;  %v1831_v26 = vrot.slane %v3144_v43, 1 }
 0x1b7   : > { %1952 = vrot.lane.b32.xlu1 %v1920_v51, %s2686_s19  ;;  %1863 = vrot.lane.b32.xlu0 %v1831_v26, %s2687_s20  ;;  %v1832_v38 = vsel %vm1808_vm2, %v1830_v37, %v1831_v26  ;;  %v1921_v25 = vsel %vm1897_vm1, %v1919_v16, %v1920_v51  ;;  %v1785_v26 = vadd.f32 %v3154_v44, %v3096_v14 }
 0x1b8   : > { %1861 = vrot.lane.b32.xlu2 %v1832_v38, %s2687_s20  ;;  %v1787_v14 = vadd.f32 %v3154_v44, %v3112_v2 }
 0x1b9   : > { %v1836_v42 = vpop.permute.xlu0 %1835 }
 0x1ba   : > { %v1882_v49 = vadd.f32 %v1836_v42, %v1777_v57  ;;  %v1923_v48 = vpop.permute.xlu1 %1922 }
 0x1bc   : > { %v1971_v50 = vadd.f32 %v1925_v47, %v1882_v49 }
 0x1be   : > { %v1987_v30 = vmax.f32 %v1971_v50, 0.0 }
 0x1bf   : > { %1950 = vrot.lane.b32.xlu0 %v1921_v25, %s2686_s19 }
 0x1c0   : > { %2005 = vst.msk [vmem:[%s3166_s26 + $0x8] sm:$0xf] %vm2004_vm3, %v1987_v30  ;;  %1948 = vrot.lane.b32.xlu2 %v1917_v29, %s2686_s19 }
 0x1c1   : > { %v1844_v58 = vpop.permute.xlu2 %1843  ;;  %v1834_v52 = vpop.permute.xlu0 %1833 }
 0x1c2   : > { %v1881_v54 = vadd.f32 %v1834_v52, %v1776_v45  ;;  %v1886_v18 = vadd.f32 %v1844_v58, %v1781_v6 }
 0x1c4   : > { %v1970_v36 = vadd.f32 %v1923_v48, %v1881_v54 }
 0x1c6   : > { %v1986_v56 = vmax.f32 %v1970_v36, 0.0 }
 0x1c8   : > { %2003 = vst.msk [vmem:[%s3166_s26] sm:$0xff] %vm2002_vm4, %v1986_v56 }
 0x1c9   : > { %v1842_v10 = vpop.permute.xlu2 %1841  ;;  %v1840_v23 = vpop.permute.xlu1 %1839 }
 0x1ca   : > { %v1885_v60 = vadd.f32 %v1842_v10, %v1780_v1  ;;  %v1884_v22 = vadd.f32 %v1840_v23, %v1779_v59  ;;  %v1927_v55 = vpop.permute.xlu0 %1926  ;;  %v1789_v1 = vadd.f32 %v3154_v44, %v3128_v19  ;;  %v1791_v19 = vadd.f32 %v3154_v44, %v3144_v43 }
 0x1d1   : > { %v1931_v62 = vpop.permute.xlu2 %1930  ;;  %v1929_v63 = vpop.permute.xlu1 %1928 }
 0x1d2   : > { %v1974_v0 = vadd.f32 %v1931_v62, %v1885_v60  ;;  %v1973_v3 = vadd.f32 %v1929_v63, %v1884_v22 }
 0x1d4   : > { %v1990_v4 = vmax.f32 %v1974_v0, 0.0  ;;  %v1989_v5 = vmax.f32 %v1973_v3, 0.0 }
 0x1d6   : > { %2008 = vst.msk [vmem:[%s3166_s26 + $0x20] sm:$0xff] %vm2002_vm4, %v1990_v4 }
 0x1d7   : > { %2007 = vst.msk [vmem:[%s3166_s26 + $0x18] sm:$0xf] %vm2004_vm3, %v1989_v5 }
 0x1d9   : > { %v1838_v29 = vpop.permute.xlu1 %1837  ;;  %v1937_v61 = vpop.permute.xlu2 %1936 }
 0x1da   : > { %v1883_v8 = vadd.f32 %v1838_v29, %v1778_v33  ;;  %v1933_v9 = vpop.permute.xlu0 %1932 }
 0x1db   : > { %v1975_v24 = vadd.f32 %v1933_v9, %v1886_v18 }
 0x1dc   : > { %v1972_v12 = vadd.f32 %v1927_v55, %v1883_v8  ;;  %v1788_v55 = vadd.f32 %v3154_v44, %v3126_v40  ;;  %v1790_v8 = vadd.f32 %v3154_v44, %v3141_v21 }
 0x1dd   : > { %v1991_v13 = vmax.f32 %v1975_v24, 0.0 }
 0x1de   : > { %v1988_v15 = vmax.f32 %v1972_v12, 0.0 }
 0x1df   : > { %2009 = vst.msk [vmem:[%s3166_s26 + $0x28] sm:$0xf] %vm2004_vm3, %v1991_v13 }
 0x1e0   : > { %2006 = vst.msk [vmem:[%s3166_s26 + $0x10] sm:$0xff] %vm2002_vm4, %v1988_v15 }
 0x1e2   : > { %v1850_v35 = vpop.permute.xlu2 %1849 }
 0x1e3   : > { %v1889_v42 = vadd.f32 %v1850_v35, %v1784_v53 }
 0x1e9   : > { %v1848_v17 = vpop.permute.xlu1 %1847 }
 0x1ea   : > { %v1888_v28 = vadd.f32 %v1848_v17, %v1783_v27  ;;  %v1846_v32 = vpop.permute.xlu0 %1845 }
 0x1eb   : > { %v1887_v7 = vadd.f32 %v1846_v32, %v1782_v20 }
 0x1ec   : > { %v1977_v39 = vadd.f32 %v1937_v61, %v1888_v28 }
 0x1ee   : > { %v1993_v41 = vmax.f32 %v1977_v39, 0.0 }
 0x1f0   : > { %2011 = vst.msk [vmem:[%s3166_s26 + $0x38] sm:$0xf] %vm2004_vm3, %v1993_v41 }
 0x1f1   : > { %v1935_v31 = vpop.permute.xlu1 %1934  ;;  %v1856_v57 = vpop.permute.xlu2 %1855 }
 0x1f2   : > { %v1976_v34 = vadd.f32 %v1935_v31, %v1887_v7  ;;  %v1892_v48 = vadd.f32 %v1856_v57, %v1787_v14 }
 0x1f4   : > { %v1992_v51 = vmax.f32 %v1976_v34, 0.0 }
 0x1f6   : > { %2010 = vst.msk [vmem:[%s3166_s26 + $0x30] sm:$0xff] %vm2002_vm4, %v1992_v51 }
 0x1f9   : > { %v1852_v37 = vpop.permute.xlu0 %1851  ;;  %v1941_v38 = vpop.permute.xlu1 %1940 }
 0x1fa   : > { %v1890_v16 = vadd.f32 %v1852_v37, %v1785_v26  ;;  %v1943_v45 = vpop.permute.xlu2 %1942 }
 0x1fc   : > { %v1979_v25 = vadd.f32 %v1941_v38, %v1890_v16 }
 0x1fe   : > { %v1995_v47 = vmax.f32 %v1979_v25, 0.0 }
 0x200   : > { %2013 = vst.msk [vmem:[%s3166_s26 + $0x48] sm:$0xf] %vm2004_vm3, %v1995_v47 }
 0x201   : > { %v1939_v49 = vpop.permute.xlu0 %1938 }
 0x202   : > { %v1978_v50 = vadd.f32 %v1939_v49, %v1889_v42 }
 0x204   : > { %v1994_v30 = vmax.f32 %v1978_v50, 0.0 }
 0x206   : > { %2012 = vst.msk [vmem:[%s3166_s26 + $0x40] sm:$0xff] %vm2002_vm4, %v1994_v30 }
 0x209   : > { %v1945_v58 = vpop.permute.xlu0 %1944 }
 0x20a   : > { %v1854_v52 = vpop.permute.xlu1 %1853  ;;  %v1981_v54 = vadd.f32 %v1945_v58, %v1892_v48 }
 0x20b   : > { %v1891_v36 = vadd.f32 %v1854_v52, %v1786_v11 }
 0x20c   : > { %v1997_v56 = vmax.f32 %v1981_v54, 0.0 }
 0x20d   : > { %v1980_v10 = vadd.f32 %v1943_v45, %v1891_v36 }
 0x20e   : > { %2015 = vst.msk [vmem:[%s3166_s26 + $0x58] sm:$0xf] %vm2004_vm3, %v1997_v56 }
 0x20f   : > { %v1996_v23 = vmax.f32 %v1980_v10, 0.0 }
 0x211   : > { %2014 = vst.msk [vmem:[%s3166_s26 + $0x50] sm:$0xff] %vm2002_vm4, %v1996_v23 }
 0x212   : > { %v1862_v2 = vpop.permute.xlu2 %1861 }
 0x213   : > { %v1895_v9 = vadd.f32 %v1862_v2, %v1790_v8 }
 0x219   : > { %v1860_v59 = vpop.permute.xlu1 %1859 }
 0x21a   : > { %v1894_v60 = vadd.f32 %v1860_v59, %v1789_v1  ;;  %v1949_v46 = vpop.permute.xlu2 %1948  ;;  %v1858_v62 = vpop.permute.xlu0 %1857 }
 0x21b   : > { %v1893_v0 = vadd.f32 %v1858_v62, %v1788_v55 }
 0x21c   : > { %v1983_v22 = vadd.f32 %v1949_v46, %v1894_v60 }
 0x21e   : > { %v1999_v63 = vmax.f32 %v1983_v22, 0.0 }
 0x220   : > { %2017 = vst.msk [vmem:[%s3166_s26 + $0x68] sm:$0xf] %vm2004_vm3, %v1999_v63 }
 0x221   : > { %v1947_v3 = vpop.permute.xlu1 %1946 }
 0x222   : > { %v1982_v4 = vadd.f32 %v1947_v3, %v1893_v0 }
 0x224   : > { %v1998_v5 = vmax.f32 %v1982_v4, 0.0 }
 0x226   : > { %2016 = vst.msk [vmem:[%s3166_s26 + $0x60] sm:$0xff] %vm2002_vm4, %v1998_v5 }
 0x229   : > { %v1864_v6 = vpop.permute.xlu0 %1863  ;;  %v1953_v18 = vpop.permute.xlu1 %1952 }
 0x22a   : > { %v1896_v33 = vadd.f32 %v1864_v6, %v1791_v19 }
 0x22c   : > { %v1985_v29 = vadd.f32 %v1953_v18, %v1896_v33 }
 0x22e   : > { %v2001_v40 = vmax.f32 %v1985_v29, 0.0 }
 0x230   : > { %2019 = vst.msk [vmem:[%s3166_s26 + $0x78] sm:$0xf] %vm2004_vm3, %v2001_v40 }
 0x231   : > { %v1951_v24 = vpop.permute.xlu0 %1950 }
 0x232   : > { %v1984_v12 = vadd.f32 %v1951_v24, %v1895_v9 }
 0x234   : > { %v2000_v13 = vmax.f32 %v1984_v12, 0.0 }
 0x236   : > { %2018 = vst.msk [vmem:[%s3166_s26 + $0x70] sm:$0xff] %vm2002_vm4, %v2000_v13 }
 0x237 PF: > { %s18_s29 = sadd.s32 1, %s2684_s29   ;;  %s3250_s27 = smov %s2680_s28 }
 0x238   : > { %p15_p8 = scmp.ge.s32.totalorder %s18_s29, 6   ;;  %s3251_s28 = smov %s3253_s30 }
 0x23a   :  { %17 = sbr.rel (!%p15_p8) target bundleno = 2 (0x2), region = 111 }

</bundles_post_ra>
